<compile_context>
chip_gen: v7x
topology: tpu7x:2x2x1
jax: 0.10.0
libtpu: 0.0.40
codegen_flags: <defaults>
</compile_context>

<pallas_src>
import jax
import jax.numpy as jnp
from jax import lax
from jax.experimental import pallas as pl
from jax.experimental.pallas import tpu as pltpu


def celu(x):
    # CELU(alpha=1): x if x > 0 else exp(x) - 1
    return jnp.maximum(x, 0.0) + (jnp.exp(jnp.minimum(x, 0.0)) - 1.0)


def _make_kernel(H, W, C):
    WC = W * C              # flattened (w, c) row length of the un-padded image
    WCP = (W + 2) * C       # flattened row length of the padded image

    def conv3x3_taps(pad_ref, w_ref):
        # pad_ref: (H+2, (W+2)*C) f32 padded activations
        # w_ref:   (9, W*C, W*C)  bf16 block-diagonal per-tap weights
        acc = None
        for dy in range(3):
            for dx in range(3):
                # Contiguous lane-dense slice: rows dy..dy+H, cols dx*C..dx*C+W*C.
                patch = pad_ref[dy:dy + H, dx * C:dx * C + WC].astype(jnp.bfloat16)
                part = jnp.dot(patch, w_ref[dy * 3 + dx],
                               preferred_element_type=jnp.float32)
                acc = part if acc is None else acc + part
        return acc  # (H, W*C) f32

    def kernel(x_ref, w1_ref, s1_ref, b1_ref, w2_ref, s2_ref, b2_ref,
               o_ref, pad):
        # x_ref: (1, H, W*C) f32       o_ref: (1, H, W*C) f32
        # s*/b*: (1, W*C)    f32       pad:   VMEM (H+2, (W+2)*C) f32
        #
        # Zero only the 1-pixel halo of the padded scratch.  Done every grid
        # step (cheap: a handful of vector stores) so it is correct even when
        # the batch axis is sharded across TensorCores; the interior is fully
        # overwritten below.
        zrow = jnp.zeros((1, WCP), jnp.float32)
        zcol = jnp.zeros((H + 2, C), jnp.float32)
        pad[0:1, :] = zrow
        pad[H + 1:H + 2, :] = zrow
        pad[:, 0:C] = zcol
        pad[:, C + WC:WCP] = zcol

        x = x_ref[0]                                  # (H, W*C) f32, lane-dense
        pad[1:H + 1, C:C + WC] = x                    # pad the input in VMEM

        # ---- conv1 -> BN1 (folded) -> CELU ----
        out1 = celu(conv3x3_taps(pad, w1_ref) * s1_ref[...] + b1_ref[...])

        # Reuse the same padded scratch for the conv2 input (halo still zero).
        pad[1:H + 1, C:C + WC] = out1

        # ---- conv2 -> BN2 (folded) -> + residual -> CELU ----
        out2 = conv3x3_taps(pad, w2_ref) * s2_ref[...] + b2_ref[...] + x
        o_ref[0] = celu(out2)

    return kernel


def _block_diag_weight(w_hwio, W):
    """(3,3,C,P) HWIO conv weight -> (9, W*C, W*P) block-diagonal per-tap weight.

    B[t, w*C + c, w'*P + p] = w_hwio[dy, dx, c, p] if w == w' else 0, t = dy*3+dx.
    """
    kh, kw, C, P = w_hwio.shape
    eye = jnp.eye(W, dtype=w_hwio.dtype)
    wt = w_hwio.reshape(kh * kw, C, P)
    bd = jnp.einsum('uv,tcp->tucvp', eye, wt)
    return bd.reshape(kh * kw, W * C, W * P)


def basic_block_pallas(x_nchw, w1, w2, scale1, bias1, scale2, bias2):
    """x_nchw: (N, C, H, W) f32; w*: (3,3,C,C) HWIO; scale/bias: (C,) folded BN."""
    N, C, H, W = x_nchw.shape
    P = w1.shape[-1]
    assert C == P, "identity residual requires inplanes == planes"
    WC = W * C

    # Glue: NCHW -> NHWC -> (N, H, W*C) lane-dense view (reshape is free in HBM).
    x_flat = jnp.transpose(x_nchw, (0, 2, 3, 1)).reshape(N, H, WC)

    # Block-diagonal per-tap weights in bf16 (MXU-native input dtype).
    w1_bd = _block_diag_weight(w1, W).astype(jnp.bfloat16)
    w2_bd = _block_diag_weight(w2, W).astype(jnp.bfloat16)

    # Per-channel BN scale/bias tiled to the lane-dense (1, W*C) layout.
    s1 = jnp.tile(scale1, W).reshape(1, WC)
    b1 = jnp.tile(bias1, W).reshape(1, WC)
    s2 = jnp.tile(scale2, W).reshape(1, WC)
    b2 = jnp.tile(bias2, W).reshape(1, WC)

    kernel = _make_kernel(H, W, C)

    out_flat = pl.pallas_call(
        kernel,
        out_shape=jax.ShapeDtypeStruct((N, H, WC), jnp.float32),
        grid_spec=pltpu.PrefetchScalarGridSpec(
            num_scalar_prefetch=0,
            grid=(N,),
            in_specs=[
                pl.BlockSpec((1, H, WC), lambda n: (n, 0, 0)),
                # Constant-index weight / scale / bias blocks (fetched once).
                pl.BlockSpec((9, WC, WC), lambda n: (0, 0, 0)),
                pl.BlockSpec((1, WC), lambda n: (0, 0)),
                pl.BlockSpec((1, WC), lambda n: (0, 0)),
                pl.BlockSpec((9, WC, WC), lambda n: (0, 0, 0)),
                pl.BlockSpec((1, WC), lambda n: (0, 0)),
                pl.BlockSpec((1, WC), lambda n: (0, 0)),
            ],
            out_specs=pl.BlockSpec((1, H, WC), lambda n: (n, 0, 0)),
            scratch_shapes=[pltpu.VMEM((H + 2, (W + 2) * C), jnp.float32)],
        ),
        compiler_params=pltpu.CompilerParams(
            dimension_semantics=("parallel",),
        ),
    )(x_flat, w1_bd, s1, b1, w2_bd, s2, b2)

    # Glue: back to NCHW.
    return jnp.transpose(out_flat.reshape(N, H, W, C), (0, 3, 1, 2))


def reference_jax(x_nchw, w1, w2, scale1, bias1, scale2, bias2):
    x = jnp.transpose(x_nchw, (0, 2, 3, 1))
    dn = lax.conv_dimension_numbers(x.shape, w1.shape, ('NHWC', 'HWIO', 'NHWC'))
    y = lax.conv_general_dilated(x, w1, (1, 1), 'SAME', dimension_numbers=dn)
    y = celu(y * scale1 + bias1)
    y2 = lax.conv_general_dilated(y, w2, (1, 1), 'SAME', dimension_numbers=dn)
    y2 = celu(y2 * scale2 + bias2 + x)
    return jnp.transpose(y2, (0, 3, 1, 2))


if __name__ == "__main__":
    # BasicBlock(inplanes=8, planes=8, stride=1, downsample=None)
    N, C, H, W = 2, 8, 16, 16
    key = jax.random.PRNGKey(0)
    kx, kw1, kw2 = jax.random.split(key, 3)

    x = jax.random.normal(kx, (N, C, H, W), dtype=jnp.float32)

    # conv weights in HWIO layout, deterministic init
    w1 = jax.random.normal(kw1, (3, 3, C, C), dtype=jnp.float32) * 0.1
    w2 = jax.random.normal(kw2, (3, 3, C, C), dtype=jnp.float32) * 0.1

    # BatchNorm params at PyTorch defaults (weight=1, bias=0, mean=0, var=1),
    # folded into a per-channel affine: scale = gamma / sqrt(var + eps),
    # bias = beta - mean * scale.
    eps = 1e-5
    gamma = jnp.ones((C,), jnp.float32)
    beta = jnp.zeros((C,), jnp.float32)
    rmean = jnp.zeros((C,), jnp.float32)
    rvar = jnp.ones((C,), jnp.float32)
    scale = gamma / jnp.sqrt(rvar + eps)
    bias = beta - rmean * scale

    out = basic_block_pallas(x, w1, w2, scale, bias, scale, bias)
    out = jax.block_until_ready(out)

    ref = reference_jax(x, w1, w2, scale, bias, scale, bias)
    assert out.shape == (N, C, H, W)
    # bf16 MXU inputs with f32 accumulation -> relaxed tolerance vs f32 reference.
    assert jnp.allclose(out, ref, rtol=2e-2, atol=2e-2)

    print("KERNEL_OK")
</pallas_src>

<mosaic_0001>
module attributes {stable_mosaic.version = 11 : i64} {
  func.func @kernel(%arg0: i32, %arg1: memref<1x16x128xf32, #tpu.memory_space<vmem>>, %arg2: memref<9x128x128xbf16, #tpu.memory_space<vmem>>, %arg3: memref<1x128xf32, #tpu.memory_space<vmem>>, %arg4: memref<1x128xf32, #tpu.memory_space<vmem>>, %arg5: memref<9x128x128xbf16, #tpu.memory_space<vmem>>, %arg6: memref<1x128xf32, #tpu.memory_space<vmem>>, %arg7: memref<1x128xf32, #tpu.memory_space<vmem>>, %arg8: memref<1x16x128xf32, #tpu.memory_space<vmem>>, %arg9: memref<18x144xf32, #tpu.memory_space<vmem>>) attributes {dimension_semantics = [#tpu.dimension_semantics<parallel>], iteration_bounds = array<i64: 2>, scalar_prefetch = 0 : i64, scratch_operands = 1 : i64, tpu.core_type = #tpu.core_type<tc>, window_params = [{transform_indices = @transform_0, window_bounds = array<i64: 1, 16, 128>}, {pipeline_mode = #tpu.pipeline_mode<synchronous>, transform_indices = @transform_1, window_bounds = array<i64: 9, 128, 128>}, {pipeline_mode = #tpu.pipeline_mode<synchronous>, transform_indices = @transform_2, window_bounds = array<i64: 1, 128>}, {pipeline_mode = #tpu.pipeline_mode<synchronous>, transform_indices = @transform_3, window_bounds = array<i64: 1, 128>}, {pipeline_mode = #tpu.pipeline_mode<synchronous>, transform_indices = @transform_4, window_bounds = array<i64: 9, 128, 128>}, {pipeline_mode = #tpu.pipeline_mode<synchronous>, transform_indices = @transform_5, window_bounds = array<i64: 1, 128>}, {pipeline_mode = #tpu.pipeline_mode<synchronous>, transform_indices = @transform_6, window_bounds = array<i64: 1, 128>}, {transform_indices = @transform_7, window_bounds = array<i64: 1, 16, 128>}]} {
    %cst = arith.constant 0.000000e+00 : f32
    %0 = vector.broadcast %cst : f32 to vector<1x144xf32>
    %cst_0 = arith.constant 0.000000e+00 : f32
    %1 = vector.broadcast %cst_0 : f32 to vector<18x8xf32>
    %c0 = arith.constant 0 : index
    %c0_1 = arith.constant 0 : index
    %2 = vector.load %arg9[%c0, %c0_1] : memref<18x144xf32, #tpu.memory_space<vmem>>, vector<1x144xf32>
    tpu.vector_store %arg9[%c0, %c0_1], %0 {strides = array<i32>} : memref<18x144xf32, #tpu.memory_space<vmem>>, vector<1x144xf32>,
    %c17 = arith.constant 17 : index
    %c0_2 = arith.constant 0 : index
    %3 = vector.load %arg9[%c17, %c0_2] : memref<18x144xf32, #tpu.memory_space<vmem>>, vector<1x144xf32>
    tpu.vector_store %arg9[%c17, %c0_2], %0 {strides = array<i32>} : memref<18x144xf32, #tpu.memory_space<vmem>>, vector<1x144xf32>,
    %c0_3 = arith.constant 0 : index
    %c0_4 = arith.constant 0 : index
    %4 = vector.load %arg9[%c0_3, %c0_4] : memref<18x144xf32, #tpu.memory_space<vmem>>, vector<18x8xf32>
    tpu.vector_store %arg9[%c0_3, %c0_4], %1 {strides = array<i32>} : memref<18x144xf32, #tpu.memory_space<vmem>>, vector<18x8xf32>,
    %c0_5 = arith.constant 0 : index
    %c136 = arith.constant 136 : index
    %5 = vector.load %arg9[%c0_5, %c136] : memref<18x144xf32, #tpu.memory_space<vmem>>, vector<18x8xf32>
    tpu.vector_store %arg9[%c0_5, %c136], %1 {strides = array<i32>} : memref<18x144xf32, #tpu.memory_space<vmem>>, vector<18x8xf32>,
    %c0_6 = arith.constant 0 : index
    %c0_7 = arith.constant 0 : index
    %c0_8 = arith.constant 0 : index
    %6 = vector.load %arg1[%c0_6, %c0_7, %c0_8] : memref<1x16x128xf32, #tpu.memory_space<vmem>>, vector<1x16x128xf32>
    %7 = vector.shape_cast %6 : vector<1x16x128xf32> to vector<16x128xf32>
    %c1 = arith.constant 1 : index
    %c8 = arith.constant 8 : index
    %8 = vector.load %arg9[%c1, %c8] : memref<18x144xf32, #tpu.memory_space<vmem>>, vector<16x128xf32>
    tpu.vector_store %arg9[%c1, %c8], %7 {strides = array<i32>} : memref<18x144xf32, #tpu.memory_space<vmem>>, vector<16x128xf32>,
    %c0_9 = arith.constant 0 : index
    %c0_10 = arith.constant 0 : index
    %9 = vector.load %arg9[%c0_9, %c0_10] : memref<18x144xf32, #tpu.memory_space<vmem>>, vector<16x128xf32>
    %10 = arith.truncf %9 : vector<16x128xf32> to vector<16x128xbf16>
    %c0_11 = arith.constant 0 : index
    %c0_12 = arith.constant 0 : index
    %c0_13 = arith.constant 0 : index
    %11 = vector.load %arg2[%c0_11, %c0_12, %c0_13] : memref<9x128x128xbf16, #tpu.memory_space<vmem>>, vector<1x128x128xbf16>
    %12 = vector.shape_cast %11 : vector<1x128x128xbf16> to vector<128x128xbf16>
    %cst_14 = arith.constant dense<0.000000e+00> : vector<16x128xf32>
    %13 = tpu.matmul %10, %12, %cst_14 {dimension_numbers = #tpu.dot_dimension_numbers<[1], [0], [0], [1], [0, 0, 1, 1], [], []>} : vector<16x128xbf16>, vector<128x128xbf16>, vector<16x128xf32> -> vector<16x128xf32>
    %c0_15 = arith.constant 0 : index
    %c8_16 = arith.constant 8 : index
    %14 = vector.load %arg9[%c0_15, %c8_16] : memref<18x144xf32, #tpu.memory_space<vmem>>, vector<16x128xf32>
    %15 = arith.truncf %14 : vector<16x128xf32> to vector<16x128xbf16>
    %c1_17 = arith.constant 1 : index
    %c0_18 = arith.constant 0 : index
    %c0_19 = arith.constant 0 : index
    %16 = vector.load %arg2[%c1_17, %c0_18, %c0_19] : memref<9x128x128xbf16, #tpu.memory_space<vmem>>, vector<1x128x128xbf16>
    %17 = vector.shape_cast %16 : vector<1x128x128xbf16> to vector<128x128xbf16>
    %cst_20 = arith.constant dense<0.000000e+00> : vector<16x128xf32>
    %18 = tpu.matmul %15, %17, %cst_20 {dimension_numbers = #tpu.dot_dimension_numbers<[1], [0], [0], [1], [0, 0, 1, 1], [], []>} : vector<16x128xbf16>, vector<128x128xbf16>, vector<16x128xf32> -> vector<16x128xf32>
    %19 = arith.addf %13, %18 : vector<16x128xf32>
    %c0_21 = arith.constant 0 : index
    %c16 = arith.constant 16 : index
    %20 = vector.load %arg9[%c0_21, %c16] : memref<18x144xf32, #tpu.memory_space<vmem>>, vector<16x128xf32>
    %21 = arith.truncf %20 : vector<16x128xf32> to vector<16x128xbf16>
    %c2 = arith.constant 2 : index
    %c0_22 = arith.constant 0 : index
    %c0_23 = arith.constant 0 : index
    %22 = vector.load %arg2[%c2, %c0_22, %c0_23] : memref<9x128x128xbf16, #tpu.memory_space<vmem>>, vector<1x128x128xbf16>
    %23 = vector.shape_cast %22 : vector<1x128x128xbf16> to vector<128x128xbf16>
    %cst_24 = arith.constant dense<0.000000e+00> : vector<16x128xf32>
    %24 = tpu.matmul %21, %23, %cst_24 {dimension_numbers = #tpu.dot_dimension_numbers<[1], [0], [0], [1], [0, 0, 1, 1], [], []>} : vector<16x128xbf16>, vector<128x128xbf16>, vector<16x128xf32> -> vector<16x128xf32>
    %25 = arith.addf %19, %24 : vector<16x128xf32>
    %c1_25 = arith.constant 1 : index
    %c0_26 = arith.constant 0 : index
    %26 = vector.load %arg9[%c1_25, %c0_26] : memref<18x144xf32, #tpu.memory_space<vmem>>, vector<16x128xf32>
    %27 = arith.truncf %26 : vector<16x128xf32> to vector<16x128xbf16>
    %c3 = arith.constant 3 : index
    %c0_27 = arith.constant 0 : index
    %c0_28 = arith.constant 0 : index
    %28 = vector.load %arg2[%c3, %c0_27, %c0_28] : memref<9x128x128xbf16, #tpu.memory_space<vmem>>, vector<1x128x128xbf16>
    %29 = vector.shape_cast %28 : vector<1x128x128xbf16> to vector<128x128xbf16>
    %cst_29 = arith.constant dense<0.000000e+00> : vector<16x128xf32>
    %30 = tpu.matmul %27, %29, %cst_29 {dimension_numbers = #tpu.dot_dimension_numbers<[1], [0], [0], [1], [0, 0, 1, 1], [], []>} : vector<16x128xbf16>, vector<128x128xbf16>, vector<16x128xf32> -> vector<16x128xf32>
    %31 = arith.addf %25, %30 : vector<16x128xf32>
    %c1_30 = arith.constant 1 : index
    %c8_31 = arith.constant 8 : index
    %32 = vector.load %arg9[%c1_30, %c8_31] : memref<18x144xf32, #tpu.memory_space<vmem>>, vector<16x128xf32>
    %33 = arith.truncf %32 : vector<16x128xf32> to vector<16x128xbf16>
    %c4 = arith.constant 4 : index
    %c0_32 = arith.constant 0 : index
    %c0_33 = arith.constant 0 : index
    %34 = vector.load %arg2[%c4, %c0_32, %c0_33] : memref<9x128x128xbf16, #tpu.memory_space<vmem>>, vector<1x128x128xbf16>
    %35 = vector.shape_cast %34 : vector<1x128x128xbf16> to vector<128x128xbf16>
    %cst_34 = arith.constant dense<0.000000e+00> : vector<16x128xf32>
    %36 = tpu.matmul %33, %35, %cst_34 {dimension_numbers = #tpu.dot_dimension_numbers<[1], [0], [0], [1], [0, 0, 1, 1], [], []>} : vector<16x128xbf16>, vector<128x128xbf16>, vector<16x128xf32> -> vector<16x128xf32>
    %37 = arith.addf %31, %36 : vector<16x128xf32>
    %c1_35 = arith.constant 1 : index
    %c16_36 = arith.constant 16 : index
    %38 = vector.load %arg9[%c1_35, %c16_36] : memref<18x144xf32, #tpu.memory_space<vmem>>, vector<16x128xf32>
    %39 = arith.truncf %38 : vector<16x128xf32> to vector<16x128xbf16>
    %c5 = arith.constant 5 : index
    %c0_37 = arith.constant 0 : index
    %c0_38 = arith.constant 0 : index
    %40 = vector.load %arg2[%c5, %c0_37, %c0_38] : memref<9x128x128xbf16, #tpu.memory_space<vmem>>, vector<1x128x128xbf16>
    %41 = vector.shape_cast %40 : vector<1x128x128xbf16> to vector<128x128xbf16>
    %cst_39 = arith.constant dense<0.000000e+00> : vector<16x128xf32>
    %42 = tpu.matmul %39, %41, %cst_39 {dimension_numbers = #tpu.dot_dimension_numbers<[1], [0], [0], [1], [0, 0, 1, 1], [], []>} : vector<16x128xbf16>, vector<128x128xbf16>, vector<16x128xf32> -> vector<16x128xf32>
    %43 = arith.addf %37, %42 : vector<16x128xf32>
    %c2_40 = arith.constant 2 : index
    %c0_41 = arith.constant 0 : index
    %44 = vector.load %arg9[%c2_40, %c0_41] : memref<18x144xf32, #tpu.memory_space<vmem>>, vector<16x128xf32>
    %45 = arith.truncf %44 : vector<16x128xf32> to vector<16x128xbf16>
    %c6 = arith.constant 6 : index
    %c0_42 = arith.constant 0 : index
    %c0_43 = arith.constant 0 : index
    %46 = vector.load %arg2[%c6, %c0_42, %c0_43] : memref<9x128x128xbf16, #tpu.memory_space<vmem>>, vector<1x128x128xbf16>
    %47 = vector.shape_cast %46 : vector<1x128x128xbf16> to vector<128x128xbf16>
    %cst_44 = arith.constant dense<0.000000e+00> : vector<16x128xf32>
    %48 = tpu.matmul %45, %47, %cst_44 {dimension_numbers = #tpu.dot_dimension_numbers<[1], [0], [0], [1], [0, 0, 1, 1], [], []>} : vector<16x128xbf16>, vector<128x128xbf16>, vector<16x128xf32> -> vector<16x128xf32>
    %49 = arith.addf %43, %48 : vector<16x128xf32>
    %c2_45 = arith.constant 2 : index
    %c8_46 = arith.constant 8 : index
    %50 = vector.load %arg9[%c2_45, %c8_46] : memref<18x144xf32, #tpu.memory_space<vmem>>, vector<16x128xf32>
    %51 = arith.truncf %50 : vector<16x128xf32> to vector<16x128xbf16>
    %c7 = arith.constant 7 : index
    %c0_47 = arith.constant 0 : index
    %c0_48 = arith.constant 0 : index
    %52 = vector.load %arg2[%c7, %c0_47, %c0_48] : memref<9x128x128xbf16, #tpu.memory_space<vmem>>, vector<1x128x128xbf16>
    %53 = vector.shape_cast %52 : vector<1x128x128xbf16> to vector<128x128xbf16>
    %cst_49 = arith.constant dense<0.000000e+00> : vector<16x128xf32>
    %54 = tpu.matmul %51, %53, %cst_49 {dimension_numbers = #tpu.dot_dimension_numbers<[1], [0], [0], [1], [0, 0, 1, 1], [], []>} : vector<16x128xbf16>, vector<128x128xbf16>, vector<16x128xf32> -> vector<16x128xf32>
    %55 = arith.addf %49, %54 : vector<16x128xf32>
    %c2_50 = arith.constant 2 : index
    %c16_51 = arith.constant 16 : index
    %56 = vector.load %arg9[%c2_50, %c16_51] : memref<18x144xf32, #tpu.memory_space<vmem>>, vector<16x128xf32>
    %57 = arith.truncf %56 : vector<16x128xf32> to vector<16x128xbf16>
    %c8_52 = arith.constant 8 : index
    %c0_53 = arith.constant 0 : index
    %c0_54 = arith.constant 0 : index
    %58 = vector.load %arg2[%c8_52, %c0_53, %c0_54] : memref<9x128x128xbf16, #tpu.memory_space<vmem>>, vector<1x128x128xbf16>
    %59 = vector.shape_cast %58 : vector<1x128x128xbf16> to vector<128x128xbf16>
    %cst_55 = arith.constant dense<0.000000e+00> : vector<16x128xf32>
    %60 = tpu.matmul %57, %59, %cst_55 {dimension_numbers = #tpu.dot_dimension_numbers<[1], [0], [0], [1], [0, 0, 1, 1], [], []>} : vector<16x128xbf16>, vector<128x128xbf16>, vector<16x128xf32> -> vector<16x128xf32>
    %61 = arith.addf %55, %60 : vector<16x128xf32>
    %c0_56 = arith.constant 0 : index
    %c0_57 = arith.constant 0 : index
    %62 = vector.load %arg3[%c0_56, %c0_57] : memref<1x128xf32, #tpu.memory_space<vmem>>, vector<1x128xf32>
    %63 = vector.broadcast %62 : vector<1x128xf32> to vector<16x128xf32>
    %64 = arith.mulf %61, %63 : vector<16x128xf32>
    %c0_58 = arith.constant 0 : index
    %c0_59 = arith.constant 0 : index
    %65 = vector.load %arg4[%c0_58, %c0_59] : memref<1x128xf32, #tpu.memory_space<vmem>>, vector<1x128xf32>
    %66 = vector.broadcast %65 : vector<1x128xf32> to vector<16x128xf32>
    %67 = arith.addf %64, %66 : vector<16x128xf32>
    %cst_60 = arith.constant 0.000000e+00 : f32
    %68 = vector.broadcast %cst_60 : f32 to vector<16x128xf32>
    %69 = arith.maximumf %67, %68 : vector<16x128xf32>
    %cst_61 = arith.constant 0.000000e+00 : f32
    %70 = vector.broadcast %cst_61 : f32 to vector<16x128xf32>
    %71 = arith.minimumf %67, %70 : vector<16x128xf32>
    %72 = math.exp %71 : vector<16x128xf32>
    %cst_62 = arith.constant 1.000000e+00 : f32
    %73 = vector.broadcast %cst_62 : f32 to vector<16x128xf32>
    %74 = arith.subf %72, %73 : vector<16x128xf32>
    %75 = arith.addf %69, %74 : vector<16x128xf32>
    %c1_63 = arith.constant 1 : index
    %c8_64 = arith.constant 8 : index
    %76 = vector.load %arg9[%c1_63, %c8_64] : memref<18x144xf32, #tpu.memory_space<vmem>>, vector<16x128xf32>
    tpu.vector_store %arg9[%c1_63, %c8_64], %75 {strides = array<i32>} : memref<18x144xf32, #tpu.memory_space<vmem>>, vector<16x128xf32>,
    %c0_65 = arith.constant 0 : index
    %c0_66 = arith.constant 0 : index
    %77 = vector.load %arg9[%c0_65, %c0_66] : memref<18x144xf32, #tpu.memory_space<vmem>>, vector<16x128xf32>
    %78 = arith.truncf %77 : vector<16x128xf32> to vector<16x128xbf16>
    %c0_67 = arith.constant 0 : index
    %c0_68 = arith.constant 0 : index
    %c0_69 = arith.constant 0 : index
    %79 = vector.load %arg5[%c0_67, %c0_68, %c0_69] : memref<9x128x128xbf16, #tpu.memory_space<vmem>>, vector<1x128x128xbf16>
    %80 = vector.shape_cast %79 : vector<1x128x128xbf16> to vector<128x128xbf16>
    %cst_70 = arith.constant dense<0.000000e+00> : vector<16x128xf32>
    %81 = tpu.matmul %78, %80, %cst_70 {dimension_numbers = #tpu.dot_dimension_numbers<[1], [0], [0], [1], [0, 0, 1, 1], [], []>} : vector<16x128xbf16>, vector<128x128xbf16>, vector<16x128xf32> -> vector<16x128xf32>
    %c0_71 = arith.constant 0 : index
    %c8_72 = arith.constant 8 : index
    %82 = vector.load %arg9[%c0_71, %c8_72] : memref<18x144xf32, #tpu.memory_space<vmem>>, vector<16x128xf32>
    %83 = arith.truncf %82 : vector<16x128xf32> to vector<16x128xbf16>
    %c1_73 = arith.constant 1 : index
    %c0_74 = arith.constant 0 : index
    %c0_75 = arith.constant 0 : index
    %84 = vector.load %arg5[%c1_73, %c0_74, %c0_75] : memref<9x128x128xbf16, #tpu.memory_space<vmem>>, vector<1x128x128xbf16>
    %85 = vector.shape_cast %84 : vector<1x128x128xbf16> to vector<128x128xbf16>
    %cst_76 = arith.constant dense<0.000000e+00> : vector<16x128xf32>
    %86 = tpu.matmul %83, %85, %cst_76 {dimension_numbers = #tpu.dot_dimension_numbers<[1], [0], [0], [1], [0, 0, 1, 1], [], []>} : vector<16x128xbf16>, vector<128x128xbf16>, vector<16x128xf32> -> vector<16x128xf32>
    %87 = arith.addf %81, %86 : vector<16x128xf32>
    %c0_77 = arith.constant 0 : index
    %c16_78 = arith.constant 16 : index
    %88 = vector.load %arg9[%c0_77, %c16_78] : memref<18x144xf32, #tpu.memory_space<vmem>>, vector<16x128xf32>
    %89 = arith.truncf %88 : vector<16x128xf32> to vector<16x128xbf16>
    %c2_79 = arith.constant 2 : index
    %c0_80 = arith.constant 0 : index
    %c0_81 = arith.constant 0 : index
    %90 = vector.load %arg5[%c2_79, %c0_80, %c0_81] : memref<9x128x128xbf16, #tpu.memory_space<vmem>>, vector<1x128x128xbf16>
    %91 = vector.shape_cast %90 : vector<1x128x128xbf16> to vector<128x128xbf16>
    %cst_82 = arith.constant dense<0.000000e+00> : vector<16x128xf32>
    %92 = tpu.matmul %89, %91, %cst_82 {dimension_numbers = #tpu.dot_dimension_numbers<[1], [0], [0], [1], [0, 0, 1, 1], [], []>} : vector<16x128xbf16>, vector<128x128xbf16>, vector<16x128xf32> -> vector<16x128xf32>
    %93 = arith.addf %87, %92 : vector<16x128xf32>
    %c1_83 = arith.constant 1 : index
    %c0_84 = arith.constant 0 : index
    %94 = vector.load %arg9[%c1_83, %c0_84] : memref<18x144xf32, #tpu.memory_space<vmem>>, vector<16x128xf32>
    %95 = arith.truncf %94 : vector<16x128xf32> to vector<16x128xbf16>
    %c3_85 = arith.constant 3 : index
    %c0_86 = arith.constant 0 : index
    %c0_87 = arith.constant 0 : index
    %96 = vector.load %arg5[%c3_85, %c0_86, %c0_87] : memref<9x128x128xbf16, #tpu.memory_space<vmem>>, vector<1x128x128xbf16>
    %97 = vector.shape_cast %96 : vector<1x128x128xbf16> to vector<128x128xbf16>
    %cst_88 = arith.constant dense<0.000000e+00> : vector<16x128xf32>
    %98 = tpu.matmul %95, %97, %cst_88 {dimension_numbers = #tpu.dot_dimension_numbers<[1], [0], [0], [1], [0, 0, 1, 1], [], []>} : vector<16x128xbf16>, vector<128x128xbf16>, vector<16x128xf32> -> vector<16x128xf32>
    %99 = arith.addf %93, %98 : vector<16x128xf32>
    %c1_89 = arith.constant 1 : index
    %c8_90 = arith.constant 8 : index
    %100 = vector.load %arg9[%c1_89, %c8_90] : memref<18x144xf32, #tpu.memory_space<vmem>>, vector<16x128xf32>
    %101 = arith.truncf %100 : vector<16x128xf32> to vector<16x128xbf16>
    %c4_91 = arith.constant 4 : index
    %c0_92 = arith.constant 0 : index
    %c0_93 = arith.constant 0 : index
    %102 = vector.load %arg5[%c4_91, %c0_92, %c0_93] : memref<9x128x128xbf16, #tpu.memory_space<vmem>>, vector<1x128x128xbf16>
    %103 = vector.shape_cast %102 : vector<1x128x128xbf16> to vector<128x128xbf16>
    %cst_94 = arith.constant dense<0.000000e+00> : vector<16x128xf32>
    %104 = tpu.matmul %101, %103, %cst_94 {dimension_numbers = #tpu.dot_dimension_numbers<[1], [0], [0], [1], [0, 0, 1, 1], [], []>} : vector<16x128xbf16>, vector<128x128xbf16>, vector<16x128xf32> -> vector<16x128xf32>
    %105 = arith.addf %99, %104 : vector<16x128xf32>
    %c1_95 = arith.constant 1 : index
    %c16_96 = arith.constant 16 : index
    %106 = vector.load %arg9[%c1_95, %c16_96] : memref<18x144xf32, #tpu.memory_space<vmem>>, vector<16x128xf32>
    %107 = arith.truncf %106 : vector<16x128xf32> to vector<16x128xbf16>
    %c5_97 = arith.constant 5 : index
    %c0_98 = arith.constant 0 : index
    %c0_99 = arith.constant 0 : index
    %108 = vector.load %arg5[%c5_97, %c0_98, %c0_99] : memref<9x128x128xbf16, #tpu.memory_space<vmem>>, vector<1x128x128xbf16>
    %109 = vector.shape_cast %108 : vector<1x128x128xbf16> to vector<128x128xbf16>
    %cst_100 = arith.constant dense<0.000000e+00> : vector<16x128xf32>
    %110 = tpu.matmul %107, %109, %cst_100 {dimension_numbers = #tpu.dot_dimension_numbers<[1], [0], [0], [1], [0, 0, 1, 1], [], []>} : vector<16x128xbf16>, vector<128x128xbf16>, vector<16x128xf32> -> vector<16x128xf32>
    %111 = arith.addf %105, %110 : vector<16x128xf32>
    %c2_101 = arith.constant 2 : index
    %c0_102 = arith.constant 0 : index
    %112 = vector.load %arg9[%c2_101, %c0_102] : memref<18x144xf32, #tpu.memory_space<vmem>>, vector<16x128xf32>
    %113 = arith.truncf %112 : vector<16x128xf32> to vector<16x128xbf16>
    %c6_103 = arith.constant 6 : index
    %c0_104 = arith.constant 0 : index
    %c0_105 = arith.constant 0 : index
    %114 = vector.load %arg5[%c6_103, %c0_104, %c0_105] : memref<9x128x128xbf16, #tpu.memory_space<vmem>>, vector<1x128x128xbf16>
    %115 = vector.shape_cast %114 : vector<1x128x128xbf16> to vector<128x128xbf16>
    %cst_106 = arith.constant dense<0.000000e+00> : vector<16x128xf32>
    %116 = tpu.matmul %113, %115, %cst_106 {dimension_numbers = #tpu.dot_dimension_numbers<[1], [0], [0], [1], [0, 0, 1, 1], [], []>} : vector<16x128xbf16>, vector<128x128xbf16>, vector<16x128xf32> -> vector<16x128xf32>
    %117 = arith.addf %111, %116 : vector<16x128xf32>
    %c2_107 = arith.constant 2 : index
    %c8_108 = arith.constant 8 : index
    %118 = vector.load %arg9[%c2_107, %c8_108] : memref<18x144xf32, #tpu.memory_space<vmem>>, vector<16x128xf32>
    %119 = arith.truncf %118 : vector<16x128xf32> to vector<16x128xbf16>
    %c7_109 = arith.constant 7 : index
    %c0_110 = arith.constant 0 : index
    %c0_111 = arith.constant 0 : index
    %120 = vector.load %arg5[%c7_109, %c0_110, %c0_111] : memref<9x128x128xbf16, #tpu.memory_space<vmem>>, vector<1x128x128xbf16>
    %121 = vector.shape_cast %120 : vector<1x128x128xbf16> to vector<128x128xbf16>
    %cst_112 = arith.constant dense<0.000000e+00> : vector<16x128xf32>
    %122 = tpu.matmul %119, %121, %cst_112 {dimension_numbers = #tpu.dot_dimension_numbers<[1], [0], [0], [1], [0, 0, 1, 1], [], []>} : vector<16x128xbf16>, vector<128x128xbf16>, vector<16x128xf32> -> vector<16x128xf32>
    %123 = arith.addf %117, %122 : vector<16x128xf32>
    %c2_113 = arith.constant 2 : index
    %c16_114 = arith.constant 16 : index
    %124 = vector.load %arg9[%c2_113, %c16_114] : memref<18x144xf32, #tpu.memory_space<vmem>>, vector<16x128xf32>
    %125 = arith.truncf %124 : vector<16x128xf32> to vector<16x128xbf16>
    %c8_115 = arith.constant 8 : index
    %c0_116 = arith.constant 0 : index
    %c0_117 = arith.constant 0 : index
    %126 = vector.load %arg5[%c8_115, %c0_116, %c0_117] : memref<9x128x128xbf16, #tpu.memory_space<vmem>>, vector<1x128x128xbf16>
    %127 = vector.shape_cast %126 : vector<1x128x128xbf16> to vector<128x128xbf16>
    %cst_118 = arith.constant dense<0.000000e+00> : vector<16x128xf32>
    %128 = tpu.matmul %125, %127, %cst_118 {dimension_numbers = #tpu.dot_dimension_numbers<[1], [0], [0], [1], [0, 0, 1, 1], [], []>} : vector<16x128xbf16>, vector<128x128xbf16>, vector<16x128xf32> -> vector<16x128xf32>
    %129 = arith.addf %123, %128 : vector<16x128xf32>
    %c0_119 = arith.constant 0 : index
    %c0_120 = arith.constant 0 : index
    %130 = vector.load %arg6[%c0_119, %c0_120] : memref<1x128xf32, #tpu.memory_space<vmem>>, vector<1x128xf32>
    %131 = vector.broadcast %130 : vector<1x128xf32> to vector<16x128xf32>
    %132 = arith.mulf %129, %131 : vector<16x128xf32>
    %c0_121 = arith.constant 0 : index
    %c0_122 = arith.constant 0 : index
    %133 = vector.load %arg7[%c0_121, %c0_122] : memref<1x128xf32, #tpu.memory_space<vmem>>, vector<1x128xf32>
    %134 = vector.broadcast %133 : vector<1x128xf32> to vector<16x128xf32>
    %135 = arith.addf %132, %134 : vector<16x128xf32>
    %136 = arith.addf %135, %7 : vector<16x128xf32>
    %cst_123 = arith.constant 0.000000e+00 : f32
    %137 = vector.broadcast %cst_123 : f32 to vector<16x128xf32>
    %138 = arith.maximumf %136, %137 : vector<16x128xf32>
    %cst_124 = arith.constant 0.000000e+00 : f32
    %139 = vector.broadcast %cst_124 : f32 to vector<16x128xf32>
    %140 = arith.minimumf %136, %139 : vector<16x128xf32>
    %141 = math.exp %140 : vector<16x128xf32>
    %cst_125 = arith.constant 1.000000e+00 : f32
    %142 = vector.broadcast %cst_125 : f32 to vector<16x128xf32>
    %143 = arith.subf %141, %142 : vector<16x128xf32>
    %144 = arith.addf %138, %143 : vector<16x128xf32>
    %c0_126 = arith.constant 0 : index
    %c0_127 = arith.constant 0 : index
    %c0_128 = arith.constant 0 : index
    %145 = vector.load %arg8[%c0_126, %c0_127, %c0_128] : memref<1x16x128xf32, #tpu.memory_space<vmem>>, vector<1x16x128xf32>
    %146 = vector.shape_cast %145 : vector<1x16x128xf32> to vector<16x128xf32>
    %147 = vector.shape_cast %144 : vector<16x128xf32> to vector<1x16x128xf32>
    tpu.vector_store %arg8[%c0_126, %c0_127, %c0_128], %147 {strides = array<i32>} : memref<1x16x128xf32, #tpu.memory_space<vmem>>, vector<1x16x128xf32>,
    return
  }
  func.func @transform_0(%arg0: i32) -> (i32, i32, i32) {
    %c0_i32 = arith.constant 0 : i32
    %c0_i32_0 = arith.constant 0 : i32
    %c0_i32_1 = arith.constant 0 : i32
    return %arg0, %c0_i32, %c0_i32_0 : i32, i32, i32
  }
  func.func @transform_1(%arg0: i32) -> (i32, i32, i32) {
    %c0_i32 = arith.constant 0 : i32
    %c0_i32_0 = arith.constant 0 : i32
    %c0_i32_1 = arith.constant 0 : i32
    %c0_i32_2 = arith.constant 0 : i32
    return %c0_i32, %c0_i32_0, %c0_i32_1 : i32, i32, i32
  }
  func.func @transform_2(%arg0: i32) -> (i32, i32) {
    %c0_i32 = arith.constant 0 : i32
    %c0_i32_0 = arith.constant 0 : i32
    %c0_i32_1 = arith.constant 0 : i32
    return %c0_i32, %c0_i32_0 : i32, i32
  }
  func.func @transform_3(%arg0: i32) -> (i32, i32) {
    %c0_i32 = arith.constant 0 : i32
    %c0_i32_0 = arith.constant 0 : i32
    %c0_i32_1 = arith.constant 0 : i32
    return %c0_i32, %c0_i32_0 : i32, i32
  }
  func.func @transform_4(%arg0: i32) -> (i32, i32, i32) {
    %c0_i32 = arith.constant 0 : i32
    %c0_i32_0 = arith.constant 0 : i32
    %c0_i32_1 = arith.constant 0 : i32
    %c0_i32_2 = arith.constant 0 : i32
    return %c0_i32, %c0_i32_0, %c0_i32_1 : i32, i32, i32
  }
  func.func @transform_5(%arg0: i32) -> (i32, i32) {
    %c0_i32 = arith.constant 0 : i32
    %c0_i32_0 = arith.constant 0 : i32
    %c0_i32_1 = arith.constant 0 : i32
    return %c0_i32, %c0_i32_0 : i32, i32
  }
  func.func @transform_6(%arg0: i32) -> (i32, i32) {
    %c0_i32 = arith.constant 0 : i32
    %c0_i32_0 = arith.constant 0 : i32
    %c0_i32_1 = arith.constant 0 : i32
    return %c0_i32, %c0_i32_0 : i32, i32
  }
  func.func @transform_7(%arg0: i32) -> (i32, i32, i32) {
    %c0_i32 = arith.constant 0 : i32
    %c0_i32_0 = arith.constant 0 : i32
    %c0_i32_1 = arith.constant 0 : i32
    return %arg0, %c0_i32, %c0_i32_0 : i32, i32, i32
  }
}

</mosaic_0001>

<bundles_post_ra>
// kernel: tpu_custom_call.1
= control target key start
LH: loop header
LB: loop body
LE: loop exit
PB: predicated region body
PF: predicated region fallthrough
CT: control target
= control target key end

     0   :  { %12 = vsyncpa [#allocation4], 0  ;;  %s4495_s0 = inlined_call_operand.hbm [shape: f32[2,16,128], index: 0, kind: input, shape index: {}]   ;;  %s4496_s1 = inlined_call_operand.hbm [shape: bf16[9,128,128], index: 1, kind: input, shape index: {}]   ;;  %s4497_s2 = inlined_call_operand.vmem [shape: f32[1,128], index: 2, kind: input, shape index: {}]   ;;  %s4498_s3 = inlined_call_operand.vmem [shape: f32[1,128], index: 3, kind: input, shape index: {}]   ;;  %s4499_s4 = inlined_call_operand.hbm [shape: bf16[9,128,128], index: 4, kind: input, shape index: {}]   ;;  %s4500_s5 = inlined_call_operand.vmem [shape: f32[1,128], index: 5, kind: input, shape index: {}]   ;;  %s4501_s6 = inlined_call_operand.vmem [shape: f32[1,128], index: 6, kind: input, shape index: {}]   ;;  %s4502_s7 = inlined_call_operand.hbm [shape: f32[2,16,128], index: 7, kind: output, shape index: {}]  }
   0x1   :  { %14 = vsyncpa [#allocation4 + $0x1], 0 }
   0x2   :  { %15 = vsyncpa [#allocation7], 0 }
   0x3   :  { %16 = vsyncpa [#allocation5], 0 }
   0x4   :  { %18 = vsyncpa [#allocation5 + $0x1], 0  ;;  %s3951_s24 = smov 0   ;;  %s3953_s25 = smov 0  }
   0x5   :  { %s3955_s26 = smov 0   ;;  %s3957_s27 = smov 0  }
   0x6 LB: > { %s3972_s28 = sadd.s32 4294967295, %s3895_s27   ;;  %s2750_s29 = sadd.s32 4294967294, %s3895_s27   ;;  %s3895_s27 = sphi %s3957_s27, %s4522_s27   ;;  %s3891_s26 = sphi %s3955_s26, %s4521_s26   ;;  %s3887_s25 = sphi %s3953_s25, %s4520_s25   ;;  %s3883_s24 = sphi %s3951_s24, %s4519_s24  }
   0x7   : > { %p44_p0 = scmp.ne.s32.totalorder %s3887_s25, %s3883_s24  ;;  %p4503_p1 = scmp.eq.s32.totalorder %s3972_s28, 0 }
   0x8   : > { %p200_p3 = scmp.eq.s32.totalorder %s2750_s29, 1  ;;  %p2751_p5 = scmp.ge.s32.totalorder %s3895_s27, 1 }
   0x9   : > { %p3981_p4 = por %p4503_p1, %p44_p0  ;;  %p207_p7 = scmp.lt.s32.totalorder %s3895_s27, 3 }
   0xa   : > { %p3986_p6 = por %p200_p3, %p44_p0  ;;  %s3897_s10 = smov [#allocation6]  }
   0xb   : > { %s4506_s30 = scalar_select %p3981_p4, 1, 0 }
   0xc   : > { %s4507_s8 = scalar_select %p3986_p6, 1, 0 }
   0xd   : > { %p3991_p8 = pnand %p2751_p5, %p207_p7  ;;  %s219_s11 = sshll.u32 %s3897_s10, 4  ;;  %s3995_s11 = int_to_ptr.vmem [resolvable:$true] %s219_s11 }
   0xe   : > { %s3898_s13 = smov [#allocation8]   ;;  %s3739_s17 = scalar_lea.hbm %s4496_s1, 9216 }
   0xf   : > { %p3520_p9 = pneg %p3991_p8  ;;  %s238_s14 = sshll.u32 %s3898_s13, 4  ;;  %s4006_s14 = int_to_ptr.vmem [resolvable:$true] %s238_s14 }
  0x10   : > { %p3740_p12 = scmp.ne.s32.totalorder %s4496_s1, %s3739_s17  ;;  %p3746_p5 = scmp.lt.u32.totalorder %s3739_s17, %s4496_s1 }
  0x11   : > { %p4002_p11 = pnand %p3520_p9, %p4503_p1 }
  0x13   : > { %p3741_p13 = pneg %p4002_p11 }
  0x15   : > { %p3742_p0 = pnand %p3741_p13, %p3740_p12 }
  0x17   : > { %p3743_p3 = pneg %p3742_p0 }
  0x19   : > { %p3748_p7 = pnand %p3746_p5, %p3743_p3 }
  0x1b   : > { %3751 = shalt.err (!%p3748_p7)
}
  0x1c   : > { %s3752_s22 = scalar_lea.vmem %s3995_s11, 9216  ;;  %p3760_p2 = scmp.lt.s32.totalorder %s3995_s11, %s3995_s11 }
  0x1d   : > { %p3753_p9 = scmp.ne.s32.totalorder %s3995_s11, %s3752_s22  ;;  %p3761_p12 = scmp.lt.s32.totalorder %s3752_s22, %s3752_s22 }
  0x1f   : > { %p3755_p10 = pnand %p3753_p9, %p3741_p13  ;;  %p3762_p0 = por %p3761_p12, %p3760_p2 }
  0x21   : > { %p3756_p1 = pneg %p3755_p10 }
  0x23   : > { %p3763_p6 = pnand %p3762_p0, %p3756_p1 }
  0x25   : > { %3766 = shalt.err (!%p3763_p6)
}
  0x26   : > { %s3899_s23 = smov 64   ;;  %s3900_s29 = smov 4  }
  0x27   : > { %3523 = dma.hbm_to_vmem [thread:$0]  (!%p4002_p11), %s4496_s1, 9216, %s3995_s11, [#allocation7], %s3899_s23, %s3899_s23, %s3900_s29  }
  0x28   : > { %s3767_s17 = scalar_lea.hbm %s4499_s4, 9216 }
  0x29   : > { %p3768_p2 = scmp.ne.s32.totalorder %s4499_s4, %s3767_s17  ;;  %p3774_p10 = scmp.lt.u32.totalorder %s3767_s17, %s4499_s4 }
  0x2b   : > { %p3770_p1 = pnand %p3768_p2, %p3741_p13 }
  0x2d   : > { %p3771_p6 = pneg %p3770_p1 }
  0x2f   : > { %p3776_p3 = pnand %p3774_p10, %p3771_p6 }
  0x31   : > { %3779 = shalt.err (!%p3776_p3)
}
  0x32   : > { %s3780_s11 = scalar_lea.vmem %s4006_s14, 9216  ;;  %p3788_p12 = scmp.lt.s32.totalorder %s4006_s14, %s4006_s14 }
  0x33   : > { %p3781_p5 = scmp.ne.s32.totalorder %s4006_s14, %s3780_s11  ;;  %p3789_p0 = scmp.lt.s32.totalorder %s3780_s11, %s3780_s11 }
  0x35   : > { %p3783_p7 = pnand %p3781_p5, %p3741_p13  ;;  %p3790_p2 = por %p3789_p0, %p3788_p12 }
  0x37   : > { %p3784_p9 = pneg %p3783_p7 }
  0x39   : > { %p3791_p1 = pnand %p3790_p2, %p3784_p9 }
  0x3b   : > { %3794 = shalt.err (!%p3791_p1)
}
  0x3c   : > { %3526 = dma.hbm_to_vmem [thread:$0]  (!%p4002_p11), %s4499_s4, 9216, %s4006_s14, [#allocation7], %s3899_s23, %s3899_s23, %s3900_s29  }
  0x3d   : > { %s4061_s13 = sadd.s32 1, %s3895_s27   ;;  %s31_s12 = sadd.s32 1, %s3891_s26 }
  0x3e   : > { %s28_s15 = ssub.s32 %s3895_s27, %s4061_s13  ;;  %p38_p13 = scmp.ne.s32.totalorder %s3891_s26, %s3887_s25 }
  0x3f   : > { %p29_p6 = scmp.eq.s32.totalorder %s28_s15, 0  ;;  %p39_p10 = scmp.eq.s32.totalorder %s3895_s27, 0 }
  0x40   : > { %p4510_p3 = scmp.eq.s32.totalorder %s3972_s28, 1  ;;  %p3537_p7 = scmp.lt.s32.totalorder %s3895_s27, 2 }
  0x41   : > { %s4077_s17 = scalar_select %p29_p6, %s3891_s26, %s31_s12  }
  0x42   : > { %p4071_p5 = por %p4510_p3, %p38_p13  ;;  %p40_p9 = por %p39_p10, %p38_p13 }
  0x43   : > { %s258_s18 = sand.u32 1, %s3891_s26   ;;  %s2920_s14 = sshll.u32 %s3895_s27, 8 }
  0x44   : > { %s4511_s16 = scalar_select %p4071_p5, 1, 0 }
  0x45   : > { %s2755_s19 = sshll.u32 %s258_s18, 4  ;;  %s4084_s20 = scalar_lea.hbm %s4495_s0, %s2920_s14 }
  0x46   : > { %s262_s21 = scalar_lea.vmem [#allocation3], %s2755_s19  ;;  %p4088_p11 = pnand %p3537_p7, %p40_p9 }
  0x47   : > { %s269_s11 = sshll.u32 %s262_s21, 4  ;;  %s4092_s10 = scalar_lea.sflag [#allocation4], %s258_s18  ;;  %s4086_s11 = int_to_ptr.vmem [resolvable:$true] %s269_s11 }
  0x48   : > { %s3795_s12 = scalar_lea.hbm %s4084_s20, 256  ;;  %p3797_p0 = pneg %p4088_p11 }
  0x49   : > { %p3796_p12 = scmp.ne.s32.totalorder %s4084_s20, %s3795_s12  ;;  %s3800_s14 = scalar_lea.hbm %s4495_s0, 512 }
  0x4a   : > { %p3801_p13 = scmp.lt.u32.totalorder %s4084_s20, %s4495_s0  ;;  %p3802_p6 = scmp.lt.u32.totalorder %s3800_s14, %s3795_s12 }
  0x4b   : > { %p3798_p2 = pnand %p3797_p0, %p3796_p12  ;;  %p3804_p3 = scmp.lt.u32.totalorder %s3795_s12, %s4084_s20 }
  0x4c   : > { %p3803_p10 = por %p3802_p6, %p3801_p13 }
  0x4d   : > { %p3799_p1 = pneg %p3798_p2 }
  0x4e   : > { %p3805_p7 = por %p3804_p3, %p3803_p10 }
  0x50   : > { %p3806_p9 = pnand %p3805_p7, %p3799_p1 }
  0x52   : > { %3809 = shalt.err (!%p3806_p9)
}
  0x53   : > { %s3810_s18 = scalar_lea.vmem %s4086_s11, 256  ;;  %s3901_s21 = smov [#allocation3]  }
  0x54   : > { %p3811_p12 = scmp.ne.s32.totalorder %s4086_s11, %s3810_s18  ;;  %s3815_s15 = sshll.u32 %s3901_s21, 4  ;;  %s3816_s15 = int_to_ptr.vmem [resolvable:$false] %s3815_s15 }
  0x55   : > { %s3817_s19 = scalar_lea.vmem %s3816_s15, 512  ;;  %p3818_p4 = scmp.lt.s32.totalorder %s4086_s11, %s3816_s15 }
  0x56   : > { %p3813_p2 = pnand %p3811_p12, %p3797_p0  ;;  %p3819_p13 = scmp.lt.s32.totalorder %s3817_s19, %s3810_s18 }
  0x58   : > { %p3814_p5 = pneg %p3813_p2  ;;  %p3820_p6 = por %p3819_p13, %p3818_p4 }
  0x5a   : > { %p3821_p10 = pnand %p3820_p6, %p3814_p5 }
  0x5c   : > { %3824 = shalt.err (!%p3821_p10)
}
  0x5d   : > { %s3902_s12 = smov 128   ;;  %s3903_s14 = smov 8  }
  0x5e   : > { %3530 = dma.hbm_to_vmem [thread:$0]  (!%p4088_p11), %s4084_s20, 256, %s4086_s11, %s4092_s10, %s3902_s12, %s3902_s12, %s3903_s14  }
  0x5f   : > { %281 = sbr.rel (%p3991_p8) target bundleno = 1613 (0x64d), region = 48  ;;  %s4123_s23 = sand.u32 (!%p3991_p8), 1, %s3887_s25  }
  0x60   : > { %s2759_s29 = sshll.u32 (!%p3991_p8), %s4123_s23, 4  ;;  %s284_s18 = scalar_lea.sflag (!%p3991_p8), [#allocation4], %s4123_s23 }
  0x61   : > { %s4129_s21 = scalar_lea.vmem (!%p3991_p8), [#allocation3], %s2759_s29  ;;  %p4513_p4 = scmp.ne.s32.totalorder (!%p3991_p8), %s4506_s30, 0 }
  0x66   : > { %3870 = dma.done.wait (%p4513_p4), %s284_s18, 256  }
  0x67   : > { %3872 = vsyncadd (%p4513_p4), %s284_s18, 4294967040  ;;  %p4514_p5 = scmp.eq.s32.totalorder %s3972_s28, 0 }
  0x69   : > { %3874 = dma.done.wait (%p4514_p5), [#allocation7], 18432   ;;  %p4515_p8 = pmov %p4514_p5 }
  0x6a   : > { %v327_v0 = vlaneseq  ;;  %vm336_vm0 = vcmask 64512   ;;  %vm341_vm1 = vcmask 130112   ;;  %v3904_v1 = vmov 0.0   ;;  %v346_v2 = vld [vmem:[%s4129_s21] sm:$0xff]  ;;  %v347_v3 = vld [vmem:[%s4129_s21 + $0x8] sm:$0xff]  ;;  %s3905_s30 = smov 8  }
  0x6b   : > { %3876 = vsyncadd (%p4515_p8), [#allocation7], 4294948864  ;;  %338 = vst.msk [vmem:[#allocation2 + $0x10] sm:$0xff] %vm336_vm0, %v3904_v1  ;;  %3084 = vmatprep.subr.bf16.mxu0 %v3904_v1  ;;  %3264 = vmatprep.subr.bf16.mxu1 %v3904_v1  ;;  %vm339_vm3 = vcmask 58368   ;;  %vm344_vm4 = vcmask 123968   ;;  %vm350_vm5 = vcmask 1040384  }
  0x6c   : > { %vm329_vm2 = vcmp.lt.s32.totalorder %v327_v0, 144  ;;  %343 = vst.msk [vmem:[#allocation2 + $0x18] sm:$0xff] %vm341_vm1, %v3904_v1  ;;  %v351_v4 = vrot.slane %v346_v2, 7  ;;  %v352_v5 = vrot.slane %v347_v3, 7  ;;  %v3585_v7 = vld [vmem:[#allocation6 + $0x40] sm:$0xff]   ;;  %v3586_v8 = vld [vmem:[#allocation6 + $0x48] sm:$0xff]  }
  0x6d   : > { %331 = vst.msk [vmem:[#allocation2] ss:$8 sm:$0x3] %vm329_vm2, %v3904_v1  ;;  %334 = vst.msk [vmem:[#allocation2 + $0x21] ss:$8 sm:$0x3] %vm329_vm2, %v3904_v1  ;;  %3085 = vmatpush3.bf16.msra.mxu0 %v3585_v7 }
  0x6e   : > { %337 = vst.msk [vmem:[#allocation2] sm:$0xff] %vm336_vm0, %v3904_v1  ;;  %354 = vrot.lane.b32.xlu0 %v351_v4, %s3905_s30  ;;  %v353_v6 = vsel %vm350_vm5, %v351_v4, %v352_v5  ;;  %3086 = vmatprep.subr.bf16.mxu0 %v3904_v1  ;;  %v3587_v9 = vld [vmem:[#allocation6 + $0x50] sm:$0xff]   ;;  %v3588_v10 = vld [vmem:[#allocation6 + $0x58] sm:$0xff]   ;;  %v3589_v11 = vld [vmem:[#allocation6 + $0x60] sm:$0xff]   ;;  %vm363_vm6 = vcmask 1047617   ;;  %vm365_vm7 = vcmask 64513  }
  0x6f   : > { %342 = vst.msk [vmem:[#allocation2 + $0x8] sm:$0xff] %vm341_vm1, %v3904_v1  ;;  %v3590_v12 = vld [vmem:[#allocation6 + $0x68] sm:$0xff]   ;;  %v3591_v13 = vld [vmem:[#allocation6 + $0x70] sm:$0xff]   ;;  %v3592_v15 = vld [vmem:[#allocation6 + $0x78] sm:$0xff]   ;;  %vm367_vm8 = vcmask 1047616   ;;  %vm370_vm9 = vcmask 1040448  }
  0x70   : > { %340 = vst.msk [vmem:[#allocation2 + $0x20] sm:$0x3] %vm339_vm3, %v3904_v1  ;;  %vm372_vm10 = vcmask 57344   ;;  %vm3906_vm11 = vmmov 0   ;;  %s3907_s9 = smov 112   ;;  %s3908_s20 = smov 120  }
  0x71   : > { %345 = vst.msk [vmem:[#allocation2 + $0x28] sm:$0x3] %vm344_vm4, %v3904_v1  ;;  %3087 = vmatpush3.bf16.msra.mxu0 %v3586_v8  ;;  %3100 = vmatprep.mubr.msk.bf16.mxu0 %vm3906_vm11, %v3904_v1  ;;  %vm737_vm12 = vsmask.f32 7424  ;;  %vm1127_vm13 = vcmask 1046528   ;;  %vm419_vm14 = vcmask 982016  }
  0x72   : > { %356 = vrot.lane.b32.xlu0 %v353_v6, %s3905_s30  ;;  %3088 = vmatprep.subr.bf16.mxu0 %v3904_v1  ;;  %v3593_v61 = vld [vmem:[#allocation6] sm:$0xff]   ;;  %v3594_v0 = vld [vmem:[#allocation6 + $0x8] sm:$0xff]   ;;  %v3595_v2 = vld [vmem:[#allocation6 + $0x10] sm:$0xff]   ;;  %vm621_vm15 = vcmask 916480   ;;  %p4516_p0 = scmp.ne.s32.totalorder %s4511_s16, 0 }
  0x73   : > { %3280 = vmatprep.mubr.msk.bf16.mxu1 %vm3906_vm11, %v3904_v1  ;;  %v3596_v3 = vld [vmem:[#allocation6 + $0x18] sm:$0xff]   ;;  %v3597_v4 = vld [vmem:[#allocation6 + $0x20] sm:$0xff]   ;;  %v3599_v6 = vld [vmem:[#allocation6 + $0x30] sm:$0xff]  }
  0x74   : > { %v3600_v7 = vld [vmem:[#allocation6 + $0x38] sm:$0xff]   ;;  %v3601_v8 = vld [vmem:[#allocation6 + $0x80] sm:$0xff]  }
  0x75   : > { %3089 = vmatpush3.bf16.msra.mxu0 %v3587_v9  ;;  %v3602_v9 = vld [vmem:[#allocation6 + $0x88] sm:$0xff]  }
  0x76   : > { %358 = vrot.lane.b32.xlu0 %v352_v5, %s3905_s30  ;;  %3090 = vmatprep.subr.bf16.mxu0 %v3904_v1  ;;  %v3598_v5 = vld [vmem:[#allocation6 + $0x28] sm:$0xff]  }
  0x79   : > { %3091 = vmatpush3.bf16.msra.mxu0 %v3588_v10  ;;  %v3603_v10 = vld [vmem:[#allocation6 + $0x90] sm:$0xff]  }
  0x7a   : > { %3092 = vmatprep.subr.bf16.mxu0 %v3904_v1 }
  0x7d   : > { %3093 = vmatpush3.bf16.msra.mxu0 %v3589_v11  ;;  %v3604_v11 = vld [vmem:[#allocation6 + $0x98] sm:$0xff]  }
  0x7e   : > { %3094 = vmatprep.subr.bf16.mxu0 %v3904_v1 }
  0x81   : > { %3095 = vmatpush3.bf16.msra.mxu0 %v3590_v12  ;;  %v3605_v12 = vld [vmem:[#allocation6 + $0xa0] sm:$0xff]  }
  0x82   : > { %3096 = vmatprep.subr.bf16.mxu0 %v3904_v1 }
  0x85   : > { %3097 = vmatpush3.bf16.msra.mxu0 %v3591_v13  ;;  %v3606_v13 = vld [vmem:[#allocation6 + $0xa8] sm:$0xff]  }
  0x86   : > { %3098 = vmatprep.subr.bf16.mxu0 %v3904_v1 }
  0x89   : > { %3099 = vmatpush3.bf16.msra.mxu0 %v3592_v15  ;;  %v3608_v15 = vld [vmem:[#allocation6 + $0xb8] sm:$0xff]  }
  0x8a   : > { %3104 = vmatprep.subr.bf16.mxu0 %v3904_v1 }
  0xe0   : > { %v355_v14 = vpop.permute.xlu0 %354 }
  0xe1   : > { %364 = vst.msk [vmem:[#allocation2] sm:$0xfe] %vm363_vm6, %v355_v14 }
  0xe2   : > { %366 = vst.msk [vmem:[#allocation2 + $0x8] sm:$0xfe] %vm365_vm7, %v355_v14  ;;  %v3607_v14 = vld [vmem:[#allocation6 + $0xb0] sm:$0xff]  }
  0xe4   : > { %v357_v16 = vpop.permute.xlu0 %356 }
  0xe5   : > { %368 = vst.msk [vmem:[#allocation2 + $0x10] sm:$0xff] %vm367_vm8, %v357_v16 }
  0xe6   : > { %369 = vst.msk [vmem:[#allocation2 + $0x18] sm:$0xff] %vm336_vm0, %v357_v16 }
  0xe8   : > { %v359_v17 = vpop.permute.xlu0 %358  ;;  %v374_v19 = vld [vmem:[#allocation2] sm:$0xff] }
  0xe9   : > { %371 = vst.msk [vmem:[#allocation2 + $0x20] sm:$0x1] %vm370_vm9, %v359_v17  ;;  %v393_v18 = vld [vmem:[#allocation2 + $0x8] sm:$0xff]  ;;  %v842_v23 = vld [vmem:[#allocation2] sm:$0xfe] }
  0xea   : > { %373 = vst.msk [vmem:[#allocation2 + $0x28] sm:$0x1] %vm372_vm10, %v359_v17  ;;  %v843_v20 = vld [vmem:[#allocation2 + $0x8] sm:$0xfe]  ;;  %v1223_v53 = vld [vmem:[#allocation2] sm:$0xfc] }
  0xeb   : > { %v1224_v48 = vld [vmem:[#allocation2 + $0x8] sm:$0xfc]  ;;  %v3609_v17 = vld [vmem:[#allocation6 + $0xc0] sm:$0xff]  }
  0xec   : > { %v4175_v22 = vld [vmem:[#allocation2 + $0x10] sm:$0xff] }
  0xed   : > { %v394_v21 = vld [vmem:[#allocation2 + $0x18] sm:$0xff]  ;;  %v4178_v25 = vpack.c.bf16 %v4175_v22, %v374_v19  ;;  %v848_v27 = vpack.c.bf16 %v4175_v22, %v842_v23  ;;  %v1227_v54 = vpack.c.bf16 %v4175_v22, %v1223_v53  ;;  %v3612_v23 = vld [vmem:[#allocation6 + $0xd8] sm:$0xff]  }
  0xee   : > { %v395_v24 = vpack.c.bf16 %v394_v21, %v393_v18  ;;  %v849_v26 = vpack.c.bf16 %v394_v21, %v843_v20  ;;  %v1228_v49 = vpack.c.bf16 %v394_v21, %v1224_v48  ;;  %v3610_v20 = vld [vmem:[#allocation6 + $0xc8] sm:$0xff]   ;;  %v3611_v21 = vld [vmem:[#allocation6 + $0xd0] sm:$0xff]   ;;  %v3625_v48 = vld [vmem:[#allocation6 + $0x140] sm:$0xff]  }
  0xef   : > { %415 = vrot.lane.b32.xlu1 %v4178_v25, %s3908_s20  ;;  %v872_v31 = vshll.u32 %v848_v27, 16  ;;  %v870_v42 = vshrl.u32 %v848_v27, 16  ;;  %v1252_v58 = vrot.slane %v1227_v54, 1  ;;  %v3614_v27 = vld [vmem:[#allocation6 + $0xe8] sm:$0xff]   ;;  %v3628_v53 = vld [vmem:[#allocation6 + $0x158] sm:$0xff]   ;;  %v3629_v54 = vld [vmem:[#allocation6 + $0x160] sm:$0xff]  }
  0xf0   : > { %619 = vrot.lane.b32.xlu0 %v395_v24, %s3907_s9  ;;  %v884_v28 = vshll.u32 %v849_v26, 16  ;;  %v846_v30 = vld [vmem:[#allocation2 + $0x20] sm:$0x1]  ;;  %v882_v35 = vshrl.u32 %v849_v26, 16  ;;  %v1255_v55 = vrot.slane %v1228_v49, 1 }
  0xf1   : > { %v847_v29 = vld [vmem:[#allocation2 + $0x28] sm:$0x1]  ;;  %v850_v34 = vpack.c.bf16 %v846_v30, %v846_v30  ;;  %v874_v38 = vrot.slane %v872_v31, 1  ;;  %v1225_v46 = vld [vmem:[#allocation2 + $0x20] sm:$0x3] }
  0xf2   : > { %v851_v32 = vpack.c.bf16 %v847_v29, %v847_v29  ;;  %v886_v33 = vrot.slane %v884_v28, 1  ;;  %v1226_v39 = vld [vmem:[#allocation2 + $0x28] sm:$0x3]  ;;  %v1229_v51 = vpack.c.bf16 %v1225_v46, %v1225_v46  ;;  %v717_v26 = vld [vmem:[#allocation2 + $0x20] sm:$0x1] }
  0xf3   : > { %417 = vrot.lane.b32.xlu1 %v395_v24, %s3908_s20  ;;  %v877_v37 = vshll.u32 %v850_v34, 16  ;;  %v1230_v45 = vpack.c.bf16 %v1226_v39, %v1226_v39  ;;  %v875_v47 = vor.u32 %v874_v38, %v870_v42  ;;  %v3613_v24 = vld [vmem:[#allocation6 + $0xe0] sm:$0xff]   ;;  %v719_v29 = vpack.c.bf16 %v717_v26, %v717_v26  ;;  %v3615_v30 = vld [vmem:[#allocation6 + $0xf0] sm:$0xff]   ;;  %v3620_v42 = vld [vmem:[#allocation6 + $0x118] sm:$0xff]  }
  0xf4   : > { %v889_v36 = vshll.u32 %v851_v32, 16  ;;  %v887_v40 = vor.u32 %v886_v33, %v882_v35  ;;  %v1253_v56 = vrot.slane %v1229_v51, 1  ;;  %v3616_v33 = vld [vmem:[#allocation6 + $0xf8] sm:$0xff]   ;;  %v3617_v38 = vld [vmem:[#allocation6 + $0x100] sm:$0xff]   ;;  %v3626_v51 = vld [vmem:[#allocation6 + $0x148] sm:$0xff]  }
  0xf5   : > { %v879_v43 = vrot.slane %v877_v37, 1  ;;  %v1256_v52 = vrot.slane %v1230_v45, 1  ;;  %v746_v32 = vshll.u32 %v719_v29, 16  ;;  %v3623_v45 = vld [vmem:[#allocation6 + $0x130] sm:$0xff]   ;;  %v3624_v46 = vld [vmem:[#allocation6 + $0x138] sm:$0xff]   ;;  %v3654_v29 = vld [vmem:[#allocation6 + $0x228] sm:$0xff]  }
  0xf6   : > { %v891_v41 = vrot.slane %v889_v36, 1  ;;  %v1254_v59 = vsel %vm1127_vm13, %v1252_v58, %v1253_v56  ;;  %v3631_v56 = vld [vmem:[#allocation6 + $0x170] sm:$0xff]  }
  0xf7   : > { %617 = vrot.lane.b32.xlu1 %v4178_v25, %s3907_s9  ;;  %v880_v50 = vsel %vm737_vm12, %v875_v47, %v879_v43  ;;  %v1257_v57 = vsel %vm1127_vm13, %v1255_v55, %v1256_v52  ;;  %v748_v36 = vrot.slane %v746_v32, 1  ;;  %v3621_v43 = vld [vmem:[#allocation6 + $0x120] sm:$0xff]   ;;  %v3627_v52 = vld [vmem:[#allocation6 + $0x150] sm:$0xff]   ;;  %v3630_v55 = vld [vmem:[#allocation6 + $0x168] sm:$0xff]  }
  0xf8   : > { %v892_v44 = vsel %vm737_vm12, %v887_v40, %v891_v41  ;;  %v3618_v40 = vld [vmem:[#allocation6 + $0x108] sm:$0xff]   ;;  %v3619_v41 = vld [vmem:[#allocation6 + $0x110] sm:$0xff]  }
  0xf9   : > { %895 = vrot.lane.b32.xlu0 %v892_v44, %s3908_s20  ;;  %v3651_v26 = vld [vmem:[#allocation6 + $0x210] sm:$0xff]  }
  0xfb   : > { %893 = vrot.lane.b32.xlu1 %v880_v50, %s3908_s20 }
  0xfd   : > { %1009 = vrot.lane.b32.xlu0 %v892_v44, %s3907_s9  ;;  %v3622_v44 = vld [vmem:[#allocation6 + $0x128] sm:$0xff]  }
  0xff   : > { %1007 = vrot.lane.b32.xlu1 %v880_v50, %s3907_s9 }
 0x101   : > { %1260 = vrot.lane.b32.xlu0 %v1257_v57, %s3908_s20 }
 0x103   : > { %1258 = vrot.lane.b32.xlu1 %v1254_v59, %s3908_s20 }
 0x105   : > { %1374 = vrot.lane.b32.xlu0 %v1257_v57, %s3907_s9  ;;  %v3632_v57 = vld [vmem:[#allocation6 + $0x178] sm:$0xff]  }
 0x107   : > { %1372 = vrot.lane.b32.xlu1 %v1254_v59, %s3907_s9  ;;  %v3633_v59 = vld [vmem:[#allocation6 + $0x180] sm:$0xff]  }
 0x161   : > { %v416_v60 = vpop.permute.xlu1 %415 }
 0x162   : > { %v620_v18 = vpop.permute.xlu0 %619 }
 0x165   : > { %v418_v62 = vpop.permute.xlu1 %417 }
 0x166   : > { %v420_v63 = vsel %vm419_vm14, %v416_v60, %v418_v62  ;;  %v3634_v62 = vld [vmem:[#allocation6 + $0x188] sm:$0xff]  }
 0x167   : > { %3101 = vmatmul.mubr.bf16.vlgmr.msra.gmra.mrb[0].mxu0 %v420_v63  ;;  %v3635_v63 = vld [vmem:[#allocation6 + $0x190] sm:$0xff]  }
 0x168   : > { %3105 = vmatpush3.bf16.msra.mxu0 %v3593_v61  ;;  %3120 = vmatprep.mubr.msk.bf16.mxu0 %vm3906_vm11, %v3904_v1 }
 0x169   : > { %3106 = vmatprep.subr.bf16.mxu0 %v3904_v1  ;;  %v618_v16 = vpop.permute.xlu1 %617 }
 0x16a   : > { %v622_v19 = vsel %vm621_vm15, %v618_v16, %v620_v18  ;;  %v3645_v16 = vld [vmem:[#allocation6 + $0x1e0] sm:$0xff]   ;;  %v3647_v18 = vld [vmem:[#allocation6 + $0x1f0] sm:$0xff]  }
 0x16b   : > { %v896_v49 = vpop.permute.xlu0 %895 }
 0x16c   : > { %3107 = vmatpush3.bf16.msra.mxu0 %v3594_v0  ;;  %v3636_v0 = vld [vmem:[#allocation6 + $0x198] sm:$0xff]  }
 0x16d   : > { %3108 = vmatprep.subr.bf16.mxu0 %v3904_v1  ;;  %v894_v47 = vpop.permute.xlu1 %893 }
 0x16e   : > { %v897_v50 = vsel %vm419_vm14, %v894_v47, %v896_v49 }
 0x16f   : > { %v1010_v60 = vpop.permute.xlu0 %1009 }
 0x170   : > { %3109 = vmatpush3.bf16.msra.mxu0 %v3595_v2  ;;  %v3637_v2 = vld [vmem:[#allocation6 + $0x1a0] sm:$0xff]  }
 0x171   : > { %3110 = vmatprep.subr.bf16.mxu0 %v3904_v1  ;;  %v1008_v58 = vpop.permute.xlu1 %1007 }
 0x172   : > { %v1011_v61 = vsel %vm621_vm15, %v1008_v58, %v1010_v60  ;;  %v3657_v60 = vld [vmem:[#allocation8 + $0x40] sm:$0xff]  }
 0x173   : > { %3265 = vmatpush3.bf16.msra.mxu1 %v3657_v60  ;;  %v3672_v60 = vld [vmem:[#allocation8 + $0x38] sm:$0xff]  }
 0x174   : > { %3111 = vmatpush3.bf16.msra.mxu0 %v3596_v3  ;;  %v3638_v3 = vld [vmem:[#allocation6 + $0x1a8] sm:$0xff]   ;;  %3266 = vmatprep.subr.bf16.mxu1 %v3904_v1 }
 0x175   : > { %3112 = vmatprep.subr.bf16.mxu0 %v3904_v1 }
 0x178   : > { %3113 = vmatpush3.bf16.msra.mxu0 %v3597_v4  ;;  %v1105_v4 = vld [vmem:[#allocation2 + $0x20] sm:$0x3] }
 0x179   : > { %3114 = vmatprep.subr.bf16.mxu0 %v3904_v1 }
 0x17c   : > { %3115 = vmatpush3.bf16.msra.mxu0 %v3598_v5  ;;  %v3639_v5 = vld [vmem:[#allocation6 + $0x1b0] sm:$0xff]  }
 0x17d   : > { %3116 = vmatprep.subr.bf16.mxu0 %v3904_v1 }
 0x180   : > { %3117 = vmatpush3.bf16.msra.mxu0 %v3599_v6  ;;  %v1107_v6 = vpack.c.bf16 %v1105_v4, %v1105_v4  ;;  %v3664_v4 = vld [vmem:[#allocation8 + $0x78] sm:$0xff]  }
 0x181   : > { %3118 = vmatprep.subr.bf16.mxu0 %v3904_v1 }
 0x184   : > { %3119 = vmatpush3.bf16.msra.mxu0 %v3600_v7  ;;  %v1104_v7 = vld [vmem:[#allocation2] sm:$0xfc] }
 0x185   : > { %3124 = vmatprep.subr.bf16.mxu0 %v3904_v1 }
 0x187   : > { %3121 = vmatmul.mubr.bf16.vlgmr.msra.gmra.mrb[0].mxu0 %v4178_v25  ;;  %v715_v25 = vld [vmem:[#allocation2] sm:$0xfe] }
 0x188   : > { %3125 = vmatpush3.bf16.msra.mxu0 %v3601_v8  ;;  %3140 = vmatprep.mubr.msk.bf16.mxu0 %vm3906_vm11, %v3904_v1  ;;  %v718_v28 = vpack.c.bf16 %v4175_v22, %v715_v25  ;;  %v3640_v8 = vld [vmem:[#allocation6 + $0x1b8] sm:$0xff]   ;;  %v3650_v25 = vld [vmem:[#allocation6 + $0x208] sm:$0xff]  }
 0x189   : > { %3126 = vmatprep.subr.bf16.mxu0 %v3904_v1 }
 0x18a   : > { %v741_v31 = vshll.u32 %v718_v28, 16  ;;  %v739_v35 = vshrl.u32 %v718_v28, 16  ;;  %v3653_v28 = vld [vmem:[#allocation6 + $0x220] sm:$0xff]  }
 0x18c   : > { %3127 = vmatpush3.bf16.msra.mxu0 %v3602_v9  ;;  %v743_v34 = vrot.slane %v741_v31, 1  ;;  %v1106_v9 = vpack.c.bf16 %v4175_v22, %v1104_v7  ;;  %v3643_v22 = vld [vmem:[#allocation6 + $0x1d0] sm:$0xff]   ;;  %v3656_v31 = vld [vmem:[#allocation6 + $0x238] sm:$0xff]  }
 0x18d   : > { %3128 = vmatprep.subr.bf16.mxu0 %v3904_v1 }
 0x18e   : > { %v744_v37 = vor.u32 %v743_v34, %v739_v35  ;;  %v2835_v35 = vld [vmem:[%s4497_s2] ss:$0 sm:$0xff] }
 0x190   : > { %3129 = vmatpush3.bf16.msra.mxu0 %v3603_v10  ;;  %v749_v39 = vsel %vm737_vm12, %v744_v37, %v748_v36  ;;  %v1129_v10 = vrot.slane %v1107_v6, 1  ;;  %v2836_v37 = vld [vmem:[%s4498_s3] ss:$0 sm:$0xff] }
 0x191   : > { %3130 = vmatprep.subr.bf16.mxu0 %v3904_v1 }
 0x194   : > { %3131 = vmatpush3.bf16.msra.mxu0 %v3604_v11  ;;  %v1128_v11 = vrot.slane %v1106_v9, 1 }
 0x195   : > { %3132 = vmatprep.subr.bf16.mxu0 %v3904_v1 }
 0x198   : > { %3133 = vmatpush3.bf16.msra.mxu0 %v3605_v12  ;;  %v3641_v12 = vld [vmem:[#allocation6 + $0x1c0] sm:$0xff]  }
 0x199   : > { %3134 = vmatprep.subr.bf16.mxu0 %v3904_v1 }
 0x19c   : > { %3135 = vmatpush3.bf16.msra.mxu0 %v3606_v13  ;;  %v1130_v13 = vsel %vm1127_vm13, %v1128_v11, %v1129_v10 }
 0x19d   : > { %3136 = vmatprep.subr.bf16.mxu0 %v3904_v1 }
 0x1a0   : > { %3137 = vmatpush3.bf16.msra.mxu0 %v3607_v14  ;;  %v3642_v14 = vld [vmem:[#allocation6 + $0x1c8] sm:$0xff]  }
 0x1a1   : > { %3138 = vmatprep.subr.bf16.mxu0 %v3904_v1 }
 0x1a4   : > { %3139 = vmatpush3.bf16.msra.mxu0 %v3608_v15  ;;  %v3644_v15 = vld [vmem:[#allocation6 + $0x1d8] sm:$0xff]  }
 0x1a5   : > { %3144 = vmatprep.subr.bf16.mxu0 %v3904_v1 }
 0x1a7   : > { %3141 = vmatmul.mubr.bf16.vlgmr.msra.gmra.mrb[0].mxu0 %v622_v19  ;;  %v3648_v19 = vld [vmem:[#allocation6 + $0x1f8] sm:$0xff]  }
 0x1a8   : > { %3145 = vmatpush3.bf16.msra.mxu0 %v3609_v17  ;;  %3160 = vmatprep.mubr.msk.bf16.mxu0 %vm3906_vm11, %v3904_v1  ;;  %v3646_v17 = vld [vmem:[#allocation6 + $0x1e8] sm:$0xff]  }
 0x1a9   : > { %3146 = vmatprep.subr.bf16.mxu0 %v3904_v1 }
 0x1ac   : > { %3147 = vmatpush3.bf16.msra.mxu0 %v3610_v20  ;;  %v1259_v20 = vpop.permute.xlu1 %1258 }
 0x1ad   : > { %3148 = vmatprep.subr.bf16.mxu0 %v3904_v1 }
 0x1b0   : > { %3149 = vmatpush3.bf16.msra.mxu0 %v3611_v21  ;;  %v3649_v21 = vld [vmem:[#allocation6 + $0x200] sm:$0xff]   ;;  %v1373_v32 = vpop.permute.xlu1 %1372 }
 0x1b1   : > { %3150 = vmatprep.subr.bf16.mxu0 %v3904_v1 }
 0x1b4   : > { %3151 = vmatpush3.bf16.msra.mxu0 %v3612_v23  ;;  %v1261_v23 = vpop.permute.xlu0 %1260 }
 0x1b5   : > { %3152 = vmatprep.subr.bf16.mxu0 %v3904_v1 }
 0x1b8   : > { %3153 = vmatpush3.bf16.msra.mxu0 %v3613_v24  ;;  %v1262_v24 = vsel %vm419_vm14, %v1259_v20, %v1261_v23  ;;  %v3667_v23 = vld [vmem:[#allocation8 + $0x10] sm:$0xff]  }
 0x1b9   : > { %3154 = vmatprep.subr.bf16.mxu0 %v3904_v1 }
 0x1bc   : > { %3155 = vmatpush3.bf16.msra.mxu0 %v3614_v27  ;;  %v3652_v27 = vld [vmem:[#allocation6 + $0x218] sm:$0xff]  }
 0x1bd   : > { %3156 = vmatprep.subr.bf16.mxu0 %v3904_v1 }
 0x1c0   : > { %3157 = vmatpush3.bf16.msra.mxu0 %v3615_v30  ;;  %v3655_v30 = vld [vmem:[#allocation6 + $0x230] sm:$0xff]  }
 0x1c1   : > { %3158 = vmatprep.subr.bf16.mxu0 %v3904_v1 }
 0x1c4   : > { %3159 = vmatpush3.bf16.msra.mxu0 %v3616_v33  ;;  %v1375_v33 = vpop.permute.xlu0 %1374 }
 0x1c5   : > { %3164 = vmatprep.subr.bf16.mxu0 %v3904_v1  ;;  %v1376_v34 = vsel %vm621_vm15, %v1373_v32, %v1375_v33  ;;  %v3669_v33 = vld [vmem:[#allocation8 + $0x20] sm:$0xff]  }
 0x1c7   : > { %3161 = vmatmul.mubr.bf16.vlgmr.msra.gmra.mrb[0].mxu0 %v749_v39 }
 0x1c8   : > { %3165 = vmatpush3.bf16.msra.mxu0 %v3617_v38  ;;  %3180 = vmatprep.mubr.msk.bf16.mxu0 %vm3906_vm11, %v3904_v1 }
 0x1c9   : > { %3166 = vmatprep.subr.bf16.mxu0 %v3904_v1 }
 0x1cc   : > { %3167 = vmatpush3.bf16.msra.mxu0 %v3618_v40 }
 0x1cd   : > { %3168 = vmatprep.subr.bf16.mxu0 %v3904_v1 }
 0x1d0   : > { %3169 = vmatpush3.bf16.msra.mxu0 %v3619_v41 }
 0x1d1   : > { %3170 = vmatprep.subr.bf16.mxu0 %v3904_v1 }
 0x1d4   : > { %3171 = vmatpush3.bf16.msra.mxu0 %v3620_v42 }
 0x1d5   : > { %3172 = vmatprep.subr.bf16.mxu0 %v3904_v1 }
 0x1d8   : > { %3173 = vmatpush3.bf16.msra.mxu0 %v3621_v43 }
 0x1d9   : > { %3174 = vmatprep.subr.bf16.mxu0 %v3904_v1 }
 0x1dc   : > { %3175 = vmatpush3.bf16.msra.mxu0 %v3622_v44 }
 0x1dd   : > { %3176 = vmatprep.subr.bf16.mxu0 %v3904_v1 }
 0x1e0   : > { %3177 = vmatpush3.bf16.msra.mxu0 %v3623_v45 }
 0x1e1   : > { %3178 = vmatprep.subr.bf16.mxu0 %v3904_v1 }
 0x1e4   : > { %3179 = vmatpush3.bf16.msra.mxu0 %v3624_v46 }
 0x1e5   : > { %3184 = vmatprep.subr.bf16.mxu0 %v3904_v1 }
 0x1e7   : > { %3181 = vmatmul.mubr.bf16.vlgmr.msra.gmra.mrb[0].mxu0 %v897_v50 }
 0x1e8   : > { %3185 = vmatpush3.bf16.msra.mxu0 %v3625_v48  ;;  %3200 = vmatprep.mubr.msk.bf16.mxu0 %vm3906_vm11, %v3904_v1 }
 0x1e9   : > { %3186 = vmatprep.subr.bf16.mxu0 %v3904_v1 }
 0x1ec   : > { %3187 = vmatpush3.bf16.msra.mxu0 %v3626_v51 }
 0x1ed   : > { %3188 = vmatprep.subr.bf16.mxu0 %v3904_v1 }
 0x1f0   : > { %3189 = vmatpush3.bf16.msra.mxu0 %v3627_v52 }
 0x1f1   : > { %3190 = vmatprep.subr.bf16.mxu0 %v3904_v1 }
 0x1f4   : > { %3191 = vmatpush3.bf16.msra.mxu0 %v3628_v53 }
 0x1f5   : > { %3192 = vmatprep.subr.bf16.mxu0 %v3904_v1 }
 0x1f8   : > { %3193 = vmatpush3.bf16.msra.mxu0 %v3629_v54 }
 0x1f9   : > { %3194 = vmatprep.subr.bf16.mxu0 %v3904_v1 }
 0x1fc   : > { %3195 = vmatpush3.bf16.msra.mxu0 %v3630_v55 }
 0x1fd   : > { %3196 = vmatprep.subr.bf16.mxu0 %v3904_v1 }
 0x200   : > { %3197 = vmatpush3.bf16.msra.mxu0 %v3631_v56 }
 0x201   : > { %3198 = vmatprep.subr.bf16.mxu0 %v3904_v1 }
 0x204   : > { %3199 = vmatpush3.bf16.msra.mxu0 %v3632_v57 }
 0x205   : > { %3204 = vmatprep.subr.bf16.mxu0 %v3904_v1 }
 0x207   : > { %3201 = vmatmul.mubr.bf16.vlgmr.msra.gmra.mrb[0].mxu0 %v1011_v61  ;;  %v3658_v61 = vld [vmem:[#allocation8 + $0x48] sm:$0xff]  }
 0x208   : > { %3205 = vmatpush3.bf16.msra.mxu0 %v3633_v59  ;;  %3220 = vmatprep.mubr.msk.bf16.mxu0 %vm3906_vm11, %v3904_v1 }
 0x209   : > { %3206 = vmatprep.subr.bf16.mxu0 %v3904_v1  ;;  %3267 = vmatpush3.bf16.msra.mxu1 %v3658_v61  ;;  %v3673_v61 = vld [vmem:[#allocation8 + $0x80] sm:$0xff]  }
 0x20a   : > { %3268 = vmatprep.subr.bf16.mxu1 %v3904_v1 }
 0x20c   : > { %3207 = vmatpush3.bf16.msra.mxu0 %v3634_v62  ;;  %v3659_v62 = vld [vmem:[#allocation8 + $0x50] sm:$0xff]  }
 0x20d   : > { %3208 = vmatprep.subr.bf16.mxu0 %v3904_v1  ;;  %3269 = vmatpush3.bf16.msra.mxu1 %v3659_v62  ;;  %v3674_v62 = vld [vmem:[#allocation8 + $0x88] sm:$0xff]  }
 0x20e   : > { %3270 = vmatprep.subr.bf16.mxu1 %v3904_v1 }
 0x210   : > { %3209 = vmatpush3.bf16.msra.mxu0 %v3635_v63  ;;  %v3660_v63 = vld [vmem:[#allocation8 + $0x58] sm:$0xff]  }
 0x211   : > { %3210 = vmatprep.subr.bf16.mxu0 %v3904_v1  ;;  %3271 = vmatpush3.bf16.msra.mxu1 %v3660_v63  ;;  %v3675_v63 = vld [vmem:[#allocation8 + $0x90] sm:$0xff]  }
 0x212   : > { %3272 = vmatprep.subr.bf16.mxu1 %v3904_v1 }
 0x214   : > { %3211 = vmatpush3.bf16.msra.mxu0 %v3636_v0  ;;  %v3661_v0 = vld [vmem:[#allocation8 + $0x60] sm:$0xff]  }
 0x215   : > { %3212 = vmatprep.subr.bf16.mxu0 %v3904_v1  ;;  %3273 = vmatpush3.bf16.msra.mxu1 %v3661_v0  ;;  %v3676_v0 = vld [vmem:[#allocation8 + $0x98] sm:$0xff]  }
 0x216   : > { %3274 = vmatprep.subr.bf16.mxu1 %v3904_v1 }
 0x218   : > { %3213 = vmatpush3.bf16.msra.mxu0 %v3637_v2  ;;  %v3662_v2 = vld [vmem:[#allocation8 + $0x68] sm:$0xff]  }
 0x219   : > { %3214 = vmatprep.subr.bf16.mxu0 %v3904_v1  ;;  %3275 = vmatpush3.bf16.msra.mxu1 %v3662_v2  ;;  %v3677_v2 = vld [vmem:[#allocation8 + $0xa0] sm:$0xff]  }
 0x21a   : > { %3276 = vmatprep.subr.bf16.mxu1 %v3904_v1 }
 0x21c   : > { %3215 = vmatpush3.bf16.msra.mxu0 %v3638_v3  ;;  %v3663_v3 = vld [vmem:[#allocation8 + $0x70] sm:$0xff]  }
 0x21d   : > { %3216 = vmatprep.subr.bf16.mxu0 %v3904_v1  ;;  %3277 = vmatpush3.bf16.msra.mxu1 %v3663_v3  ;;  %v3678_v3 = vld [vmem:[#allocation8 + $0xa8] sm:$0xff]  }
 0x21e   : > { %3278 = vmatprep.subr.bf16.mxu1 %v3904_v1 }
 0x220   : > { %3217 = vmatpush3.bf16.msra.mxu0 %v3639_v5 }
 0x221   : > { %3218 = vmatprep.subr.bf16.mxu0 %v3904_v1  ;;  %3279 = vmatpush3.bf16.msra.mxu1 %v3664_v4  ;;  %v3679_v4 = vld [vmem:[#allocation8 + $0xb0] sm:$0xff]  }
 0x222   : > { %3284 = vmatprep.subr.bf16.mxu1 %v3904_v1 }
 0x224   : > { %3219 = vmatpush3.bf16.msra.mxu0 %v3640_v8 }
 0x225   : > { %3224 = vmatprep.subr.bf16.mxu0 %v3904_v1 }
 0x227   : > { %3221 = vmatmul.mubr.bf16.vlgmr.msra.gmra.mrb[0].mxu0 %v1130_v13  ;;  %v3665_v13 = vld [vmem:[#allocation8] sm:$0xff]  }
 0x228   : > { %3225 = vmatpush3.bf16.msra.mxu0 %v3641_v12  ;;  %3240 = vmatprep.mubr.msk.bf16.mxu0 %vm3906_vm11, %v3904_v1 }
 0x229   : > { %3226 = vmatprep.subr.bf16.mxu0 %v3904_v1 }
 0x22c   : > { %3227 = vmatpush3.bf16.msra.mxu0 %v3642_v14 }
 0x22d   : > { %3228 = vmatprep.subr.bf16.mxu0 %v3904_v1 }
 0x230   : > { %3229 = vmatpush3.bf16.msra.mxu0 %v3643_v22 }
 0x231   : > { %3230 = vmatprep.subr.bf16.mxu0 %v3904_v1 }
 0x234   : > { %3231 = vmatpush3.bf16.msra.mxu0 %v3644_v15 }
 0x235   : > { %3232 = vmatprep.subr.bf16.mxu0 %v3904_v1 }
 0x238   : > { %3233 = vmatpush3.bf16.msra.mxu0 %v3645_v16  ;;  %v3666_v16 = vld [vmem:[#allocation8 + $0x8] sm:$0xff]  }
 0x239   : > { %3234 = vmatprep.subr.bf16.mxu0 %v3904_v1 }
 0x23c   : > { %3235 = vmatpush3.bf16.msra.mxu0 %v3646_v17 }
 0x23d   : > { %3236 = vmatprep.subr.bf16.mxu0 %v3904_v1 }
 0x240   : > { %3237 = vmatpush3.bf16.msra.mxu0 %v3647_v18 }
 0x241   : > { %3238 = vmatprep.subr.bf16.mxu0 %v3904_v1 }
 0x244   : > { %3239 = vmatpush3.bf16.msra.mxu0 %v3648_v19 }
 0x245   : > { %3244 = vmatprep.subr.bf16.mxu0 %v3904_v1 }
 0x247   : > { %3241 = vmatmul.mubr.bf16.vlgmr.msra.gmra.mrb[0].mxu0 %v1262_v24 }
 0x248   : > { %3245 = vmatpush3.bf16.msra.mxu0 %v3649_v21  ;;  %3260 = vmatprep.mubr.msk.bf16.mxu0 %vm3906_vm11, %v3904_v1 }
 0x249   : > { %3246 = vmatprep.subr.bf16.mxu0 %v3904_v1 }
 0x24c   : > { %3247 = vmatpush3.bf16.msra.mxu0 %v3650_v25 }
 0x24d   : > { %3248 = vmatprep.subr.bf16.mxu0 %v3904_v1 }
 0x250   : > { %3249 = vmatpush3.bf16.msra.mxu0 %v3651_v26  ;;  %v3668_v26 = vld [vmem:[#allocation8 + $0x18] sm:$0xff]  }
 0x251   : > { %3250 = vmatprep.subr.bf16.mxu0 %v3904_v1 }
 0x254   : > { %3251 = vmatpush3.bf16.msra.mxu0 %v3652_v27 }
 0x255   : > { %3252 = vmatprep.subr.bf16.mxu0 %v3904_v1 }
 0x258   : > { %3253 = vmatpush3.bf16.msra.mxu0 %v3653_v28 }
 0x259   : > { %3254 = vmatprep.subr.bf16.mxu0 %v3904_v1 }
 0x25c   : > { %3255 = vmatpush3.bf16.msra.mxu0 %v3654_v29 }
 0x25d   : > { %3256 = vmatprep.subr.bf16.mxu0 %v3904_v1 }
 0x260   : > { %3257 = vmatpush3.bf16.msra.mxu0 %v3655_v30 }
 0x261   : > { %3258 = vmatprep.subr.bf16.mxu0 %v3904_v1 }
 0x264   : > { %3259 = vmatpush3.bf16.msra.mxu0 %v3656_v31 }
 0x267   : > { %3261 = vmatmul.mubr.bf16.vlgmr.msra.gmra.mrb[0].mxu0 %v1376_v34 }
 0x33a   : > { %v1460_v36 = vpop.f32.mrb[0].mxu0 }
 0x33b   : > { %v1476_v38 = vmul.f32 %v2835_v35, %v1460_v36  ;;  %v3262_v39 = vpop.f32.mrb[1].mxu0 }
 0x33c   : > { %v1463_v40 = vpop.f32.mrb[2].mxu0 }
 0x33d   : > { %v1485_v41 = vadd.f32 %v2836_v37, %v1476_v38  ;;  %v1477_v42 = vmul.f32 %v2835_v35, %v1463_v40  ;;  %v3263_v43 = vpop.f32.mrb[3].mxu0 }
 0x33f   : > { %v1489_v44 = vmin.f32 %v1485_v41, 0.0  ;;  %v1486_v45 = vadd.f32 %v2836_v37, %v1477_v42  ;;  %v1487_v50 = vmax.f32 %v1485_v41, 0.0 }
 0x341   : > { %v1491_v46 = vmul.f32 1.442695, %v1489_v44  ;;  %v1490_v47 = vmin.f32 %v1486_v45, 0.0  ;;  %v1488_v53 = vmax.f32 %v1486_v45, 0.0 }
 0x343   : > { %3729 = vpow2.f32 %v1491_v46  ;;  %v1493_v48 = vmul.f32 1.442695, %v1490_v47  ;;  %v3670_v46 = vld [vmem:[#allocation8 + $0x28] sm:$0xff]  }
 0x345   : > { %3731 = vpow2.f32 %v1493_v48 }
 0x34d   : > { %v3730_v49 = vpop.eup %3729 }
 0x34e   : > { %v2837_v51 = vadd.f32 -1.0, %v3730_v49 }
 0x34f   : > { %v3732_v52 = vpop.eup %3731 }
 0x350   : > { %v2838_v54 = vadd.f32 -1.0, %v3732_v52  ;;  %v1497_v55 = vadd.f32 %v2837_v51, %v1487_v50 }
 0x352   : > { %v1498_v56 = vadd.f32 %v2838_v54, %v1488_v53  ;;  %v1501_v57 = vrot.slane %v1497_v55, 7  ;;  %v3671_v53 = vld [vmem:[#allocation8 + $0x30] sm:$0xff]  }
 0x354   : > { %1504 = vrot.lane.b32.xlu1 %v1501_v57, %s3905_s30  ;;  %v1502_v58 = vrot.slane %v1498_v56, 7 }
 0x356   : > { %v1503_v59 = vsel %vm350_vm5, %v1501_v57, %v1502_v58 }
 0x357   : > { %1506 = vrot.lane.b32.xlu0 %v1503_v59, %s3905_s30 }
 0x3c6   : > { %v1505_v5 = vpop.permute.xlu1 %1504 }
 0x3c7   : > { %1513 = vst.msk [vmem:[#allocation2] sm:$0xfe] %vm363_vm6, %v1505_v5 }
 0x3c8   : > { %1514 = vst.msk [vmem:[#allocation2 + $0x8] sm:$0xfe] %vm365_vm7, %v1505_v5  ;;  %v3680_v5 = vld [vmem:[#allocation8 + $0xb8] sm:$0xff]  }
 0x3c9   : > { %v1507_v6 = vpop.permute.xlu0 %1506 }
 0x3ca   : > { %1515 = vst.msk [vmem:[#allocation2 + $0x10] sm:$0xff] %vm367_vm8, %v1507_v6 }
 0x3cb   : > { %1516 = vst.msk [vmem:[#allocation2 + $0x18] sm:$0xff] %vm336_vm0, %v1507_v6 }
 0x3ce   : > { %v1519_v9 = vld [vmem:[#allocation2] sm:$0xff] }
 0x3cf   : > { %v1538_v7 = vld [vmem:[#allocation2 + $0x8] sm:$0xff]  ;;  %v1984_v19 = vld [vmem:[#allocation2] sm:$0xfe] }
 0x3d0   : > { %v1985_v18 = vld [vmem:[#allocation2 + $0x8] sm:$0xfe]  ;;  %v2364_v50 = vld [vmem:[#allocation2] sm:$0xfc] }
 0x3d1   : > { %v4313_v10 = vld [vmem:[#allocation2 + $0x10] sm:$0xff]  ;;  %v2365_v49 = vld [vmem:[#allocation2 + $0x8] sm:$0xfc] }
 0x3d2   : > { %v4311_v8 = vld [vmem:[#allocation2 + $0x18] sm:$0xff]  ;;  %v4317_v12 = vpack.c.bf16 %v4313_v10, %v1519_v9  ;;  %v1990_v21 = vpack.c.bf16 %v4313_v10, %v1984_v19  ;;  %v2368_v52 = vpack.c.bf16 %v4313_v10, %v2364_v50  ;;  %v3687_v19 = vld [vmem:[#allocation8 + $0xf0] sm:$0xff]   ;;  %v3705_v50 = vld [vmem:[#allocation8 + $0x180] sm:$0xff]  }
 0x3d3   : > { %v1540_v11 = vpack.c.bf16 %v4311_v8, %v1538_v7  ;;  %v1991_v20 = vpack.c.bf16 %v4311_v8, %v1985_v18  ;;  %v2369_v51 = vpack.c.bf16 %v4311_v8, %v2365_v49  ;;  %v3681_v7 = vld [vmem:[#allocation8 + $0xc0] sm:$0xff]  }
 0x3d4   : > { %1560 = vrot.lane.b32.xlu1 %v4317_v12, %s3908_s20  ;;  %v2014_v25 = vshll.u32 %v1990_v21, 16  ;;  %v2012_v36 = vshrl.u32 %v1990_v21, 16  ;;  %v2393_v57 = vrot.slane %v2368_v52, 1  ;;  %v3706_v52 = vld [vmem:[#allocation8 + $0x188] sm:$0xff]  }
 0x3d5   : > { %1562 = vrot.lane.b32.xlu0 %v1540_v11, %s3908_s20  ;;  %v2026_v24 = vshll.u32 %v1991_v20, 16  ;;  %v2024_v34 = vshrl.u32 %v1991_v20, 16  ;;  %v2396_v56 = vrot.slane %v2369_v51, 1 }
 0x3d6   : > { %v2016_v32 = vrot.slane %v2014_v25, 1 }
 0x3d7   : > { %v2028_v30 = vrot.slane %v2026_v24, 1 }
 0x3d8   : > { %1508 = vrot.lane.b32.xlu1 %v1502_v58, %s3905_s30  ;;  %v2017_v42 = vor.u32 %v2016_v32, %v2012_v36  ;;  %v3692_v32 = vld [vmem:[#allocation8 + $0x118] sm:$0xff]  }
 0x3d9   : > { %1761 = vrot.lane.b32.xlu0 %v4317_v12, %s3907_s9  ;;  %v2029_v40 = vor.u32 %v2028_v30, %v2024_v34  ;;  %v3690_v30 = vld [vmem:[#allocation8 + $0x108] sm:$0xff]   ;;  %v3696_v36 = vld [vmem:[#allocation8 + $0x138] sm:$0xff]  }
 0x3da   : > { %v3694_v34 = vld [vmem:[#allocation8 + $0x128] sm:$0xff]  }
 0x3dc   : > { %1763 = vrot.lane.b32.xlu1 %v1540_v11, %s3907_s9  ;;  %v3682_v11 = vld [vmem:[#allocation8 + $0xc8] sm:$0xff]  }
 0x446   : > { %v1561_v22 = vpop.permute.xlu1 %1560 }
 0x447   : > { %v1563_v14 = vpop.permute.xlu0 %1562 }
 0x448   : > { %v1564_v15 = vsel %vm419_vm14, %v1561_v22, %v1563_v14  ;;  %v3685_v14 = vld [vmem:[#allocation8 + $0xe0] sm:$0xff]   ;;  %v1858_v22 = vld [vmem:[#allocation2] sm:$0xfe] }
 0x449   : > { %3281 = vmatmul.mubr.bf16.vlgmr.msra.gmra.mrb[0].mxu1 %v1564_v15 }
 0x44a   : > { %3285 = vmatpush3.bf16.msra.mxu1 %v3665_v13  ;;  %3300 = vmatprep.mubr.msk.bf16.mxu1 %vm3906_vm11, %v3904_v1  ;;  %v1509_v17 = vpop.permute.xlu1 %1508  ;;  %v3684_v13 = vld [vmem:[#allocation8 + $0xd8] sm:$0xff]  }
 0x44b   : > { %3286 = vmatprep.subr.bf16.mxu1 %v3904_v1  ;;  %1517 = vst.msk [vmem:[#allocation2 + $0x20] sm:$0x1] %vm370_vm9, %v1509_v17  ;;  %v1762_v8 = vpop.permute.xlu0 %1761 }
 0x44c   : > { %1518 = vst.msk [vmem:[#allocation2 + $0x28] sm:$0x1] %vm372_vm10, %v1509_v17  ;;  %v1861_v17 = vpack.c.bf16 %v4313_v10, %v1858_v22  ;;  %v3722_v22 = vld [vmem:[#allocation8 + $0x208] sm:$0xff]  }
 0x44e   : > { %3287 = vmatpush3.bf16.msra.mxu1 %v3666_v16  ;;  %v1764_v6 = vpop.permute.xlu1 %1763  ;;  %v3686_v16 = vld [vmem:[#allocation8 + $0xe8] sm:$0xff]   ;;  %v1883_v20 = vshll.u32 %v1861_v17, 16  ;;  %v1881_v25 = vshrl.u32 %v1861_v17, 16  ;;  %v3725_v17 = vld [vmem:[#allocation8 + $0x220] sm:$0xff]  }
 0x44f   : > { %3288 = vmatprep.subr.bf16.mxu1 %v3904_v1  ;;  %v1765_v9 = vsel %vm621_vm15, %v1762_v8, %v1764_v6  ;;  %v3717_v6 = vld [vmem:[#allocation8 + $0x1e0] sm:$0xff]   ;;  %v3719_v8 = vld [vmem:[#allocation8 + $0x1f0] sm:$0xff]  }
 0x450   : > { %v1885_v24 = vrot.slane %v1883_v20, 1  ;;  %v3728_v20 = vld [vmem:[#allocation8 + $0x238] sm:$0xff]  }
 0x452   : > { %3289 = vmatpush3.bf16.msra.mxu1 %v3667_v23  ;;  %v1988_v28 = vld [vmem:[#allocation2 + $0x20] sm:$0x1]  ;;  %v3688_v23 = vld [vmem:[#allocation8 + $0xf8] sm:$0xff]  }
 0x453   : > { %3290 = vmatprep.subr.bf16.mxu1 %v3904_v1  ;;  %v1989_v27 = vld [vmem:[#allocation2 + $0x28] sm:$0x1]  ;;  %v1992_v31 = vpack.c.bf16 %v1988_v28, %v1988_v28  ;;  %v2366_v39 = vld [vmem:[#allocation2 + $0x20] sm:$0x3]  ;;  %v3689_v28 = vld [vmem:[#allocation8 + $0x100] sm:$0xff]  }
 0x454   : > { %v1993_v29 = vpack.c.bf16 %v1989_v27, %v1989_v27  ;;  %v2367_v38 = vld [vmem:[#allocation2 + $0x28] sm:$0x3]  ;;  %v2370_v48 = vpack.c.bf16 %v2366_v39, %v2366_v39  ;;  %v1860_v15 = vld [vmem:[#allocation2 + $0x20] sm:$0x1]  ;;  %v1886_v27 = vor.u32 %v1885_v24, %v1881_v25 }
 0x455   : > { %v2019_v37 = vshll.u32 %v1992_v31, 16  ;;  %v2371_v47 = vpack.c.bf16 %v2367_v38, %v2367_v38  ;;  %v1862_v18 = vpack.c.bf16 %v1860_v15, %v1860_v15  ;;  %v3691_v31 = vld [vmem:[#allocation8 + $0x110] sm:$0xff]  }
 0x456   : > { %3291 = vmatpush3.bf16.msra.mxu1 %v3668_v26  ;;  %v2031_v35 = vshll.u32 %v1993_v29, 16  ;;  %v2394_v55 = vrot.slane %v2370_v48, 1  ;;  %v3723_v15 = vld [vmem:[#allocation8 + $0x210] sm:$0xff]  }
 0x457   : > { %3292 = vmatprep.subr.bf16.mxu1 %v3904_v1  ;;  %v2021_v43 = vrot.slane %v2019_v37, 1  ;;  %v2397_v54 = vrot.slane %v2371_v47, 1  ;;  %v1888_v21 = vshll.u32 %v1862_v18, 16  ;;  %v3697_v37 = vld [vmem:[#allocation8 + $0x140] sm:$0xff]   ;;  %v3704_v47 = vld [vmem:[#allocation8 + $0x178] sm:$0xff]   ;;  %v3726_v18 = vld [vmem:[#allocation8 + $0x228] sm:$0xff]  }
 0x458   : > { %v2033_v41 = vrot.slane %v2031_v35, 1  ;;  %v2395_v59 = vsel %vm1127_vm13, %v2393_v57, %v2394_v55  ;;  %v3695_v35 = vld [vmem:[#allocation8 + $0x130] sm:$0xff]   ;;  %v3709_v55 = vld [vmem:[#allocation8 + $0x1a0] sm:$0xff]  }
 0x459   : > { %v2022_v45 = vsel %vm737_vm12, %v2017_v42, %v2021_v43  ;;  %v2398_v58 = vsel %vm1127_vm13, %v2396_v56, %v2397_v54  ;;  %v1890_v26 = vrot.slane %v1888_v21, 1  ;;  %v3699_v42 = vld [vmem:[#allocation8 + $0x150] sm:$0xff]   ;;  %v3700_v43 = vld [vmem:[#allocation8 + $0x158] sm:$0xff]   ;;  %v3710_v56 = vld [vmem:[#allocation8 + $0x1a8] sm:$0xff]  }
 0x45a   : > { %3293 = vmatpush3.bf16.msra.mxu1 %v3669_v33  ;;  %v2034_v44 = vsel %vm737_vm12, %v2029_v40, %v2033_v41  ;;  %2035 = vrot.lane.b32.xlu0 %v2022_v45, %s3908_s20  ;;  %v3693_v33 = vld [vmem:[#allocation8 + $0x120] sm:$0xff]   ;;  %v3698_v41 = vld [vmem:[#allocation8 + $0x148] sm:$0xff]   ;;  %v3708_v54 = vld [vmem:[#allocation8 + $0x198] sm:$0xff]  }
 0x45b   : > { %2037 = vrot.lane.b32.xlu1 %v2034_v44, %s3908_s20  ;;  %3294 = vmatprep.subr.bf16.mxu1 %v3904_v1  ;;  %v1891_v29 = vsel %vm737_vm12, %v1886_v27, %v1890_v26  ;;  %v2247_v57 = vld [vmem:[#allocation2 + $0x20] sm:$0x3] }
 0x45c   : > { %v2911_v25 = vld [vmem:[%s4500_s5] ss:$0 sm:$0xff] }
 0x45d   : > { %v2912_v27 = vld [vmem:[%s4501_s6] ss:$0 sm:$0xff] }
 0x45e   : > { %3295 = vmatpush3.bf16.msra.mxu1 %v3670_v46  ;;  %2149 = vrot.lane.b32.xlu0 %v2022_v45, %s3907_s9  ;;  %v3702_v45 = vld [vmem:[#allocation8 + $0x168] sm:$0xff]   ;;  %v3703_v46 = vld [vmem:[#allocation8 + $0x170] sm:$0xff]  }
 0x45f   : > { %2151 = vrot.lane.b32.xlu1 %v2034_v44, %s3907_s9  ;;  %3296 = vmatprep.subr.bf16.mxu1 %v3904_v1  ;;  %v3701_v44 = vld [vmem:[#allocation8 + $0x160] sm:$0xff]  }
 0x462   : > { %3297 = vmatpush3.bf16.msra.mxu1 %v3671_v53  ;;  %2399 = vrot.lane.b32.xlu0 %v2395_v59, %s3908_s20  ;;  %v3707_v53 = vld [vmem:[#allocation8 + $0x190] sm:$0xff]  }
 0x463   : > { %2401 = vrot.lane.b32.xlu1 %v2398_v58, %s3908_s20  ;;  %3298 = vmatprep.subr.bf16.mxu1 %v3904_v1  ;;  %s325_s20 = scalar_lea.vmem [#allocation9], %s2759_s29  ;;  %s3909_s29 = smov [#allocation9]  }
 0x464   : > { %s2658_s11 = sshll.u32 %s325_s20, 4  ;;  %s3829_s19 = sshll.u32 %s3909_s29, 4  ;;  %s4450_s11 = int_to_ptr.vmem [resolvable:$true] %s2658_s11  ;;  %s3830_s19 = int_to_ptr.vmem [resolvable:$false] %s3829_s19 }
 0x465   : > { %s3825_s15 = scalar_lea.vmem %s4450_s11, 256  ;;  %s3831_s12 = scalar_lea.vmem %s3830_s19, 512 }
 0x466   : > { %3299 = vmatpush3.bf16.msra.mxu1 %v3672_v60  ;;  %2513 = vrot.lane.b32.xlu0 %v2395_v59, %s3907_s9  ;;  %v2249_v59 = vpack.c.bf16 %v2247_v57, %v2247_v57  ;;  %v2246_v60 = vld [vmem:[#allocation2] sm:$0xfc]  ;;  %p3826_p11 = scmp.ne.s32.totalorder %s4450_s11, %s3825_s15  ;;  %p3832_p7 = scmp.lt.s32.totalorder %s4450_s11, %s3830_s19 }
 0x467   : > { %2515 = vrot.lane.b32.xlu1 %v2398_v58, %s3907_s9  ;;  %3304 = vmatprep.subr.bf16.mxu1 %v3904_v1  ;;  %v3711_v58 = vld [vmem:[#allocation8 + $0x1b0] sm:$0xff]   ;;  %s2921_s9 = sshll.u32 %s3972_s28, 8  ;;  %s2645_s28 = scalar_lea.sflag [#allocation5], %s4123_s23 }
 0x468   : > { %s4448_s10 = scalar_lea.hbm %s4502_s7, %s2921_s9  ;;  %p3827_p1 = pnand %p3826_p11, %p4516_p0 }
 0x469   : > { %3301 = vmatmul.mubr.bf16.vlgmr.msra.gmra.mrb[0].mxu1 %v4317_v12  ;;  %v3683_v12 = vld [vmem:[#allocation8 + $0xd0] sm:$0xff]   ;;  %p3833_p9 = scmp.lt.s32.totalorder %s3831_s12, %s3825_s15 }
 0x46a   : > { %3305 = vmatpush3.bf16.msra.mxu1 %v3673_v61  ;;  %3320 = vmatprep.mubr.msk.bf16.mxu1 %vm3906_vm11, %v3904_v1  ;;  %v3712_v61 = vld [vmem:[#allocation8 + $0x1b8] sm:$0xff]   ;;  %p3828_p3 = pneg %p3827_p1 }
 0x46b   : > { %3306 = vmatprep.subr.bf16.mxu1 %v3904_v1  ;;  %p3834_p12 = por %p3833_p9, %p3832_p7 }
 0x46d   : > { %p3835_p2 = pnand %p3834_p12, %p3828_p3 }
 0x46e   : > { %3307 = vmatpush3.bf16.msra.mxu1 %v3674_v62  ;;  %v2248_v62 = vpack.c.bf16 %v4313_v10, %v2246_v60  ;;  %v3715_v10 = vld [vmem:[#allocation8 + $0x1d0] sm:$0xff]  }
 0x46f   : > { %3308 = vmatprep.subr.bf16.mxu1 %v3904_v1 }
 0x472   : > { %3309 = vmatpush3.bf16.msra.mxu1 %v3675_v63  ;;  %v2270_v63 = vrot.slane %v2249_v59, 1 }
 0x473   : > { %3310 = vmatprep.subr.bf16.mxu1 %v3904_v1 }
 0x476   : > { %3311 = vmatpush3.bf16.msra.mxu1 %v3676_v0  ;;  %v2269_v0 = vrot.slane %v2248_v62, 1 }
 0x477   : > { %3312 = vmatprep.subr.bf16.mxu1 %v3904_v1 }
 0x47a   : > { %3313 = vmatpush3.bf16.msra.mxu1 %v3677_v2  ;;  %v3713_v2 = vld [vmem:[#allocation8 + $0x1c0] sm:$0xff]  }
 0x47b   : > { %3314 = vmatprep.subr.bf16.mxu1 %v3904_v1 }
 0x47e   : > { %3315 = vmatpush3.bf16.msra.mxu1 %v3678_v3  ;;  %v2271_v3 = vsel %vm1127_vm13, %v2269_v0, %v2270_v63 }
 0x47f   : > { %3316 = vmatprep.subr.bf16.mxu1 %v3904_v1 }
 0x482   : > { %3317 = vmatpush3.bf16.msra.mxu1 %v3679_v4  ;;  %v3714_v4 = vld [vmem:[#allocation8 + $0x1c8] sm:$0xff]  }
 0x483   : > { %3318 = vmatprep.subr.bf16.mxu1 %v3904_v1 }
 0x486   : > { %3319 = vmatpush3.bf16.msra.mxu1 %v3680_v5  ;;  %v3716_v5 = vld [vmem:[#allocation8 + $0x1d8] sm:$0xff]  }
 0x487   : > { %3324 = vmatprep.subr.bf16.mxu1 %v3904_v1 }
 0x489   : > { %3321 = vmatmul.mubr.bf16.vlgmr.msra.gmra.mrb[0].mxu1 %v1765_v9  ;;  %v3720_v9 = vld [vmem:[#allocation8 + $0x1f8] sm:$0xff]  }
 0x48a   : > { %3325 = vmatpush3.bf16.msra.mxu1 %v3681_v7  ;;  %3340 = vmatprep.mubr.msk.bf16.mxu1 %vm3906_vm11, %v3904_v1  ;;  %v3718_v7 = vld [vmem:[#allocation8 + $0x1e8] sm:$0xff]  }
 0x48b   : > { %3326 = vmatprep.subr.bf16.mxu1 %v3904_v1 }
 0x48e   : > { %3327 = vmatpush3.bf16.msra.mxu1 %v3682_v11 }
 0x48f   : > { %3328 = vmatprep.subr.bf16.mxu1 %v3904_v1 }
 0x492   : > { %3329 = vmatpush3.bf16.msra.mxu1 %v3683_v12 }
 0x493   : > { %3330 = vmatprep.subr.bf16.mxu1 %v3904_v1 }
 0x496   : > { %3331 = vmatpush3.bf16.msra.mxu1 %v3684_v13  ;;  %v3721_v13 = vld [vmem:[#allocation8 + $0x200] sm:$0xff]  }
 0x497   : > { %3332 = vmatprep.subr.bf16.mxu1 %v3904_v1 }
 0x49a   : > { %3333 = vmatpush3.bf16.msra.mxu1 %v3685_v14 }
 0x49b   : > { %3334 = vmatprep.subr.bf16.mxu1 %v3904_v1 }
 0x49e   : > { %3335 = vmatpush3.bf16.msra.mxu1 %v3686_v16  ;;  %v3724_v16 = vld [vmem:[#allocation8 + $0x218] sm:$0xff]  }
 0x49f   : > { %3336 = vmatprep.subr.bf16.mxu1 %v3904_v1 }
 0x4a2   : > { %3337 = vmatpush3.bf16.msra.mxu1 %v3687_v19  ;;  %v3727_v19 = vld [vmem:[#allocation8 + $0x230] sm:$0xff]  }
 0x4a3   : > { %3338 = vmatprep.subr.bf16.mxu1 %v3904_v1 }
 0x4a6   : > { %3339 = vmatpush3.bf16.msra.mxu1 %v3688_v23 }
 0x4a7   : > { %3344 = vmatprep.subr.bf16.mxu1 %v3904_v1 }
 0x4a9   : > { %3341 = vmatmul.mubr.bf16.vlgmr.msra.gmra.mrb[0].mxu1 %v1891_v29 }
 0x4aa   : > { %3345 = vmatpush3.bf16.msra.mxu1 %v3689_v28  ;;  %3360 = vmatprep.mubr.msk.bf16.mxu1 %vm3906_vm11, %v3904_v1 }
 0x4ab   : > { %3346 = vmatprep.subr.bf16.mxu1 %v3904_v1 }
 0x4ae   : > { %3347 = vmatpush3.bf16.msra.mxu1 %v3690_v30 }
 0x4af   : > { %3348 = vmatprep.subr.bf16.mxu1 %v3904_v1 }
 0x4b2   : > { %3349 = vmatpush3.bf16.msra.mxu1 %v3691_v31 }
 0x4b3   : > { %3350 = vmatprep.subr.bf16.mxu1 %v3904_v1 }
 0x4b6   : > { %3351 = vmatpush3.bf16.msra.mxu1 %v3692_v32 }
 0x4b7   : > { %3352 = vmatprep.subr.bf16.mxu1 %v3904_v1 }
 0x4ba   : > { %3353 = vmatpush3.bf16.msra.mxu1 %v3693_v33  ;;  %v3737_v33 = vld [vmem:[%s4129_s21] sm:$0xff] }
 0x4bb   : > { %3354 = vmatprep.subr.bf16.mxu1 %v3904_v1 }
 0x4be   : > { %3355 = vmatpush3.bf16.msra.mxu1 %v3694_v34 }
 0x4bf   : > { %3356 = vmatprep.subr.bf16.mxu1 %v3904_v1 }
 0x4c2   : > { %3357 = vmatpush3.bf16.msra.mxu1 %v3695_v35 }
 0x4c3   : > { %3358 = vmatprep.subr.bf16.mxu1 %v3904_v1 }
 0x4c6   : > { %3359 = vmatpush3.bf16.msra.mxu1 %v3696_v36 }
 0x4c7   : > { %3364 = vmatprep.subr.bf16.mxu1 %v3904_v1 }
 0x4cc   : > { %v2036_v38 = vpop.permute.xlu0 %2035 }
 0x4cd   : > { %v2038_v39 = vpop.permute.xlu1 %2037 }
 0x4ce   : > { %v2039_v40 = vsel %vm419_vm14, %v2036_v38, %v2038_v39 }
 0x4cf   : > { %3361 = vmatmul.mubr.bf16.vlgmr.msra.gmra.mrb[0].mxu1 %v2039_v40 }
 0x4d0   : > { %3365 = vmatpush3.bf16.msra.mxu1 %v3697_v37  ;;  %3380 = vmatprep.mubr.msk.bf16.mxu1 %vm3906_vm11, %v3904_v1  ;;  %v2150_v48 = vpop.permute.xlu0 %2149  ;;  %v3738_v37 = vld [vmem:[%s4129_s21 + $0x8] sm:$0xff] }
 0x4d1   : > { %3366 = vmatprep.subr.bf16.mxu1 %v3904_v1  ;;  %v2152_v49 = vpop.permute.xlu1 %2151 }
 0x4d2   : > { %v2153_v51 = vsel %vm621_vm15, %v2150_v48, %v2152_v49 }
 0x4d4   : > { %3367 = vmatpush3.bf16.msra.mxu1 %v3698_v41  ;;  %v2400_v11 = vpop.permute.xlu0 %2399 }
 0x4d5   : > { %3368 = vmatprep.subr.bf16.mxu1 %v3904_v1  ;;  %v2402_v12 = vpop.permute.xlu1 %2401 }
 0x4d6   : > { %v2403_v14 = vsel %vm419_vm14, %v2400_v11, %v2402_v12 }
 0x4d8   : > { %3369 = vmatpush3.bf16.msra.mxu1 %v3699_v42  ;;  %v2514_v21 = vpop.permute.xlu0 %2513 }
 0x4d9   : > { %3370 = vmatprep.subr.bf16.mxu1 %v3904_v1  ;;  %v2516_v23 = vpop.permute.xlu1 %2515 }
 0x4da   : > { %v2517_v24 = vsel %vm621_vm15, %v2514_v21, %v2516_v23 }
 0x4dc   : > { %3371 = vmatpush3.bf16.msra.mxu1 %v3700_v43 }
 0x4dd   : > { %3372 = vmatprep.subr.bf16.mxu1 %v3904_v1 }
 0x4e0   : > { %3373 = vmatpush3.bf16.msra.mxu1 %v3701_v44 }
 0x4e1   : > { %3374 = vmatprep.subr.bf16.mxu1 %v3904_v1 }
 0x4e4   : > { %3375 = vmatpush3.bf16.msra.mxu1 %v3702_v45 }
 0x4e5   : > { %3376 = vmatprep.subr.bf16.mxu1 %v3904_v1 }
 0x4e8   : > { %3377 = vmatpush3.bf16.msra.mxu1 %v3703_v46 }
 0x4e9   : > { %3378 = vmatprep.subr.bf16.mxu1 %v3904_v1 }
 0x4ec   : > { %3379 = vmatpush3.bf16.msra.mxu1 %v3704_v47 }
 0x4ed   : > { %3384 = vmatprep.subr.bf16.mxu1 %v3904_v1 }
 0x4ef   : > { %3381 = vmatmul.mubr.bf16.vlgmr.msra.gmra.mrb[0].mxu1 %v2153_v51 }
 0x4f0   : > { %3385 = vmatpush3.bf16.msra.mxu1 %v3705_v50  ;;  %3400 = vmatprep.mubr.msk.bf16.mxu1 %vm3906_vm11, %v3904_v1 }
 0x4f1   : > { %3386 = vmatprep.subr.bf16.mxu1 %v3904_v1 }
 0x4f4   : > { %3387 = vmatpush3.bf16.msra.mxu1 %v3706_v52 }
 0x4f5   : > { %3388 = vmatprep.subr.bf16.mxu1 %v3904_v1 }
 0x4f8   : > { %3389 = vmatpush3.bf16.msra.mxu1 %v3707_v53 }
 0x4f9   : > { %3390 = vmatprep.subr.bf16.mxu1 %v3904_v1 }
 0x4fc   : > { %3391 = vmatpush3.bf16.msra.mxu1 %v3708_v54 }
 0x4fd   : > { %3392 = vmatprep.subr.bf16.mxu1 %v3904_v1 }
 0x500   : > { %3393 = vmatpush3.bf16.msra.mxu1 %v3709_v55 }
 0x501   : > { %3394 = vmatprep.subr.bf16.mxu1 %v3904_v1 }
 0x504   : > { %3395 = vmatpush3.bf16.msra.mxu1 %v3710_v56 }
 0x505   : > { %3396 = vmatprep.subr.bf16.mxu1 %v3904_v1 }
 0x508   : > { %3397 = vmatpush3.bf16.msra.mxu1 %v3711_v58 }
 0x509   : > { %3398 = vmatprep.subr.bf16.mxu1 %v3904_v1 }
 0x50c   : > { %3399 = vmatpush3.bf16.msra.mxu1 %v3712_v61 }
 0x50d   : > { %3404 = vmatprep.subr.bf16.mxu1 %v3904_v1 }
 0x50f   : > { %3401 = vmatmul.mubr.bf16.vlgmr.msra.gmra.mrb[0].mxu1 %v2271_v3 }
 0x510   : > { %3405 = vmatpush3.bf16.msra.mxu1 %v3713_v2  ;;  %3420 = vmatprep.mubr.msk.bf16.mxu1 %vm3906_vm11, %v3904_v1 }
 0x511   : > { %3406 = vmatprep.subr.bf16.mxu1 %v3904_v1 }
 0x514   : > { %3407 = vmatpush3.bf16.msra.mxu1 %v3714_v4 }
 0x515   : > { %3408 = vmatprep.subr.bf16.mxu1 %v3904_v1 }
 0x518   : > { %3409 = vmatpush3.bf16.msra.mxu1 %v3715_v10 }
 0x519   : > { %3410 = vmatprep.subr.bf16.mxu1 %v3904_v1 }
 0x51c   : > { %3411 = vmatpush3.bf16.msra.mxu1 %v3716_v5 }
 0x51d   : > { %3412 = vmatprep.subr.bf16.mxu1 %v3904_v1 }
 0x520   : > { %3413 = vmatpush3.bf16.msra.mxu1 %v3717_v6 }
 0x521   : > { %3414 = vmatprep.subr.bf16.mxu1 %v3904_v1 }
 0x524   : > { %3415 = vmatpush3.bf16.msra.mxu1 %v3718_v7 }
 0x525   : > { %3416 = vmatprep.subr.bf16.mxu1 %v3904_v1 }
 0x528   : > { %3417 = vmatpush3.bf16.msra.mxu1 %v3719_v8 }
 0x529   : > { %3418 = vmatprep.subr.bf16.mxu1 %v3904_v1 }
 0x52c   : > { %3419 = vmatpush3.bf16.msra.mxu1 %v3720_v9 }
 0x52d   : > { %3424 = vmatprep.subr.bf16.mxu1 %v3904_v1 }
 0x52f   : > { %3421 = vmatmul.mubr.bf16.vlgmr.msra.gmra.mrb[0].mxu1 %v2403_v14 }
 0x530   : > { %3425 = vmatpush3.bf16.msra.mxu1 %v3721_v13  ;;  %3440 = vmatprep.mubr.msk.bf16.mxu1 %vm3906_vm11, %v3904_v1 }
 0x531   : > { %3426 = vmatprep.subr.bf16.mxu1 %v3904_v1 }
 0x534   : > { %3427 = vmatpush3.bf16.msra.mxu1 %v3722_v22 }
 0x535   : > { %3428 = vmatprep.subr.bf16.mxu1 %v3904_v1 }
 0x538   : > { %3429 = vmatpush3.bf16.msra.mxu1 %v3723_v15 }
 0x539   : > { %3430 = vmatprep.subr.bf16.mxu1 %v3904_v1 }
 0x53c   : > { %3431 = vmatpush3.bf16.msra.mxu1 %v3724_v16 }
 0x53d   : > { %3432 = vmatprep.subr.bf16.mxu1 %v3904_v1 }
 0x540   : > { %3433 = vmatpush3.bf16.msra.mxu1 %v3725_v17 }
 0x541   : > { %3434 = vmatprep.subr.bf16.mxu1 %v3904_v1 }
 0x544   : > { %3435 = vmatpush3.bf16.msra.mxu1 %v3726_v18 }
 0x545   : > { %3436 = vmatprep.subr.bf16.mxu1 %v3904_v1 }
 0x548   : > { %3437 = vmatpush3.bf16.msra.mxu1 %v3727_v19 }
 0x549   : > { %3438 = vmatprep.subr.bf16.mxu1 %v3904_v1 }
 0x54c   : > { %3439 = vmatpush3.bf16.msra.mxu1 %v3728_v20 }
 0x54f   : > { %3441 = vmatmul.mubr.bf16.vlgmr.msra.gmra.mrb[0].mxu1 %v2517_v24 }
 0x622   : > { %v2601_v26 = vpop.f32.mrb[0].mxu1 }
 0x623   : > { %v2617_v28 = vmul.f32 %v2911_v25, %v2601_v26  ;;  %v3442_v29 = vpop.f32.mrb[1].mxu1 }
 0x624   : > { %v2604_v30 = vpop.f32.mrb[2].mxu1 }
 0x625   : > { %v2626_v1 = vadd.f32 %v2912_v27, %v2617_v28  ;;  %v2618_v31 = vmul.f32 %v2911_v25, %v2604_v30  ;;  %v3443_v32 = vpop.f32.mrb[3].mxu1 }
 0x627   : > { %v2628_v34 = vadd.f32 %v3737_v33, %v2626_v1  ;;  %v2627_v35 = vadd.f32 %v2912_v27, %v2618_v31 }
 0x629   : > { %v2632_v36 = vmin.f32 %v2628_v34, 0.0  ;;  %v2629_v38 = vadd.f32 %v3738_v37, %v2627_v35  ;;  %v2630_v43 = vmax.f32 %v2628_v34, 0.0 }
 0x62b   : > { %v2634_v39 = vmul.f32 1.442695, %v2632_v36  ;;  %v2633_v40 = vmin.f32 %v2629_v38, 0.0  ;;  %v2631_v47 = vmax.f32 %v2629_v38, 0.0 }
 0x62d   : > { %3733 = vpow2.f32 %v2634_v39  ;;  %v2636_v41 = vmul.f32 1.442695, %v2633_v40 }
 0x62f   : > { %3735 = vpow2.f32 %v2636_v41 }
 0x637   : > { %v3734_v42 = vpop.eup %3733 }
 0x638   : > { %v2913_v44 = vadd.f32 -1.0, %v3734_v42 }
 0x639   : > { %v3736_v45 = vpop.eup %3735 }
 0x63a   : > { %v2640_v46 = vadd.f32 %v2913_v44, %v2630_v43  ;;  %v2914_v48 = vadd.f32 -1.0, %v3736_v45 }
 0x63c   : > { %2642 = vst [vmem:[%s325_s20] sm:$0xff] %v2640_v46  ;;  %v2641_v49 = vadd.f32 %v2914_v48, %v2631_v47 }
 0x63e   : > { %2643 = vst [vmem:[%s325_s20 + $0x8] sm:$0xff] %v2641_v49 }
 0x63f   : > { %3838 = shalt.err (!%p3835_p2)
}
 0x640   : > { %s3839_s14 = scalar_lea.hbm %s4448_s10, 256  ;;  %s3843_s20 = scalar_lea.hbm %s4502_s7, 512 }
 0x641   : > { %p3840_p13 = scmp.ne.s32.totalorder %s4448_s10, %s3839_s14  ;;  %p3844_p4 = scmp.lt.u32.totalorder %s4448_s10, %s4502_s7 }
 0x642   : > { %p3845_p5 = scmp.lt.u32.totalorder %s3843_s20, %s3839_s14  ;;  %p3847_p11 = scmp.lt.u32.totalorder %s3839_s14, %s4448_s10 }
 0x643   : > { %p3841_p6 = pnand %p3840_p13, %p4516_p0 }
 0x644   : > { %p3846_p8 = por %p3845_p5, %p3844_p4 }
 0x645   : > { %p3842_p10 = pneg %p3841_p6 }
 0x646   : > { %p3848_p1 = por %p3847_p11, %p3846_p8 }
 0x648   : > { %p3849_p3 = pnand %p3848_p1, %p3842_p10 }
 0x64a   : > { %3852 = shalt.err (!%p3849_p3)
}
 0x64b   : > { %s3910_s15 = smov 128  }
 0x64c   : > { %3518 = dma.vmem_to_hbm [thread:$0]  (%p4516_p0), %s4450_s11, 256, %s4448_s10, %s2645_s28, %s3910_s15, %s3910_s15, %s3905_s30  }
 0x64d PF: > { %s2673_s29 = sand.u32 1, %s3883_s24   ;;  %p4517_p7 = scmp.ne.s32.totalorder %s4507_s8, 0 }
 0x64e   : > { %p4518_p9 = scmp.ge.s32.totalorder %s3895_s27, 2  ;;  %s2674_s19 = scalar_lea.sflag [#allocation5], %s2673_s29 }
 0x650   : > { %p3532_p12 = pnand %p4518_p9, %p4517_p7 }
 0x652   : > { %3878 = dma.done.wait (!%p3532_p12), %s2674_s19, 256  }
 0x653   : > { %3880 = vsyncadd (!%p3532_p12), %s2674_s19, 4294967040  ;;  %p21_p2 = scmp.ge.s32.totalorder %s4061_s13, 4   ;;  %s4519_s24 = smov %s3887_s25 }
 0x654   : > { %s4520_s25 = smov %s3891_s26  ;;  %s4521_s26 = smov %s4077_s17 }
 0x655   : > { %s4522_s27 = smov %s4061_s13  ;;  %23 = sbr.rel (!%p21_p2) target bundleno = 6 (0x6), region = 118 }
 0x65c   :  { %2679 = vsyncpa [#allocation4], 1 }
 0x65d   :  { %2681 = vsyncpa [#allocation4 + $0x1], 1 }
 0x65e   :  { %2682 = vsyncpa [#allocation7], 1 }
 0x65f   :  { %2683 = vsyncpa [#allocation5], 1 }
 0x660   :  { %2685 = vsyncpa [#allocation5 + $0x1], 1 }

</bundles_post_ra>
